<compile_context>
chip_gen: v5e
topology: v5e:2x2
jax: 0.10.0
libtpu: 0.0.40
codegen_flags: <defaults>
</compile_context>

<pallas_src>
import jax
import jax.numpy as jnp
from jax.experimental import pallas as pl
from jax.experimental.pallas import tpu as pltpu


def _round_up(x, m):
    return (x + m - 1) // m * m


# ---------------------------------------------------------------------------
# Kernel 1: global FC (GEMV-like, weight-bandwidth-bound) + bias + ReLU.
#   grid = (n_n, n_t):
#     n : 512-output-column tile  -> "parallel" (2 x 256 feeds both v7x TCs)
#     t : F reduction tile        -> "arbitrary", accumulated in VMEM scratch
# ---------------------------------------------------------------------------
def _fc_kernel(x_ref, w_ref, b_ref, out_ref, acc_ref):
    t = pl.program_id(1)

    @pl.when(t == 0)
    def _init():
        acc_ref[...] = jnp.zeros_like(acc_ref)

    # MXU-native A[M,K] @ B[K,N]: pooled (B, TF) bf16 x weight (TF, TN) bf16,
    # f32 accumulation (no RHS transpose needed thanks to pre-transposed W).
    acc_ref[...] += jnp.dot(x_ref[...], w_ref[...],
                            preferred_element_type=jnp.float32)

    @pl.when(t == pl.num_programs(1) - 1)
    def _finalize():
        out_ref[...] = jnp.maximum(acc_ref[...] + b_ref[...],
                                   0.0).astype(out_ref.dtype)


# ---------------------------------------------------------------------------
# Kernel 2: 1x1 conv on (B, 512, 1, 1) == Linear(512, 512) + bias + ReLU.
# Needs the full 512-wide hidden vector, so it lives outside the N-split FC
# kernel.  Tiny: a single step with everything resident in VMEM.
# ---------------------------------------------------------------------------
def _conv1x1_kernel(h_ref, w_ref, b_ref, out_ref):
    out = jnp.dot(h_ref[...], w_ref[...],
                  preferred_element_type=jnp.float32) + b_ref[...]
    out_ref[...] = jnp.maximum(out, 0.0)


def prepare_encoder_params(fc_w, fc_b, conv_w, conv_b, *, tile_f=8192,
                           tile_n=256):
    """One-time (model-load) weight prep: transpose / pad / bf16 cast.

    Doing this per forward call would add an extra HBM read+write pass over
    the big FC weight (negating the bf16 bandwidth win); cache the result.
    PyTorch shapes: fc_w (512, F), fc_b (512,), conv_w (512, 512, 1, 1),
    conv_b (512,).
    """
    n_out, F = fc_w.shape
    assert n_out == 512 and 512 % tile_n == 0

    TF = min(_round_up(tile_f, 128), _round_up(F, 128))
    n_t = pl.cdiv(F, TF)
    F_pad = n_t * TF

    fcw_t = jnp.transpose(fc_w).astype(jnp.bfloat16)                 # (F, 512)
    if F_pad != F:
        fcw_t = jnp.pad(fcw_t, ((0, F_pad - F), (0, 0)))             # zero rows
    conv_wt = jnp.transpose(conv_w.reshape(512, 512)).astype(jnp.bfloat16)

    return dict(
        fcw_t=fcw_t,                                                 # (F_pad, 512) bf16
        fc_b=fc_b.reshape(1, 512).astype(jnp.float32),
        conv_wt=conv_wt,                                             # (in, out) bf16
        conv_b=conv_b.reshape(1, 512).astype(jnp.float32),
        F=F, F_pad=F_pad, TF=TF, TN=tile_n,
    )


def full_image_encoder(x, params, kernel_size):
    """x: (B, C, H, W) float32; params from prepare_encoder_params."""
    B, C, H, W = x.shape
    k = kernel_size
    hp, wp = H // k, W // k
    F = C * hp * wp
    assert F == params["F"], (F, params["F"])
    F_pad, TF, TN = params["F_pad"], params["TF"], params["TN"]
    n_t = F_pad // TF
    n_n = 512 // TN

    # AvgPool2d fused into the (unavoidable) NCHW relayout; Dropout2d is the
    # identity in eval mode.  Column order (c, i, j) matches PyTorch's
    # .view(-1, 2048*hp*wp) on the pooled NCHW tensor.
    pooled = x.reshape(B, C, hp, k, wp, k).mean(axis=(3, 5)).reshape(B, F)
    pooled = pooled.astype(jnp.bfloat16)
    if F_pad != F:
        pooled = jnp.pad(pooled, ((0, 0), (0, F_pad - F)))           # zero cols

    cost = pl.CostEstimate(
        flops=2 * B * F_pad * 512,
        transcendentals=0,
        bytes_accessed=(B * F_pad + 512 * F_pad) * 2 + B * 512 * 2 + 512 * 4,
    )

    # --- FC: (B, F) x (F, 512) -> (B, 512), bias + ReLU -------------------
    hidden = pl.pallas_call(
        _fc_kernel,
        out_shape=jax.ShapeDtypeStruct((B, 512), jnp.bfloat16),
        grid_spec=pltpu.PrefetchScalarGridSpec(
            num_scalar_prefetch=0,
            grid=(n_n, n_t),
            in_specs=[
                pl.BlockSpec((B, TF), lambda n, t: (0, t)),     # pooled tile
                pl.BlockSpec((TF, TN), lambda n, t: (t, n)),    # weight tile
                pl.BlockSpec((1, TN), lambda n, t: (0, n)),     # bias tile
            ],
            out_specs=pl.BlockSpec((B, TN), lambda n, t: (0, n)),
            scratch_shapes=[pltpu.VMEM((B, TN), jnp.float32)],
        ),
        compiler_params=pltpu.CompilerParams(
            dimension_semantics=("parallel", "arbitrary"),
            vmem_limit_bytes=48 * 1024 * 1024,   # safe on v7x (64 MiB phys.)
        ),
        cost_estimate=cost,
    )(pooled, params["fcw_t"], params["fc_b"])

    # --- 1x1 conv epilogue: (B, 512) x (512, 512) + bias, ReLU ------------
    out2d = pl.pallas_call(
        _conv1x1_kernel,
        out_shape=jax.ShapeDtypeStruct((B, 512), jnp.float32),
        grid=(1,),
        in_specs=[
            pl.BlockSpec((B, 512), lambda i: (0, 0)),
            pl.BlockSpec((512, 512), lambda i: (0, 0)),
            pl.BlockSpec((1, 512), lambda i: (0, 0)),
        ],
        out_specs=pl.BlockSpec((B, 512), lambda i: (0, 0)),
    )(hidden, params["conv_wt"], params["conv_b"])

    return out2d.reshape(B, 512, 1, 1)


def reference(x, fc_w, fc_b, conv_w, conv_b, kernel_size):
    """Pure-JAX f32 mirror of the PyTorch forward (eval mode)."""
    B, C, H, W = x.shape
    k = kernel_size
    hp, wp = H // k, W // k
    pooled = x.reshape(B, C, hp, k, wp, k).mean(axis=(3, 5))
    flat = pooled.reshape(B, C * hp * wp)
    hidden = jax.nn.relu(
        jnp.dot(flat, fc_w.T, precision=jax.lax.Precision.HIGHEST) + fc_b)
    out = jax.nn.relu(
        jnp.dot(hidden, conv_w.reshape(512, 512).T,
                precision=jax.lax.Precision.HIGHEST) + conv_b)
    return out.reshape(B, 512, 1, 1)


if __name__ == "__main__":
    # Small config consistent with the module (FC input is hardcoded to
    # 2048 * hp * wp, so channels stay at 2048; spatial extent kept tiny).
    B, C, H, W, KS = 2, 2048, 4, 2, 2          # hp=2, wp=1 -> FC in = 4096
    hp, wp = H // KS, W // KS
    F = C * hp * wp

    key = jax.random.PRNGKey(0)
    kx, k1, k2, k3, k4 = jax.random.split(key, 5)
    x = jax.random.normal(kx, (B, C, H, W), dtype=jnp.float32)
    fc_w = jax.random.normal(k1, (512, F), dtype=jnp.float32) * 0.02
    fc_b = jax.random.normal(k2, (512,), dtype=jnp.float32) * 0.02
    conv_w = jax.random.normal(k3, (512, 512, 1, 1), dtype=jnp.float32) * 0.02
    conv_b = jax.random.normal(k4, (512,), dtype=jnp.float32) * 0.02

    # Model-load-time weight prep (cached; NOT on the per-call path).
    # tile_f=2048 here only so the small test exercises >1 reduction step;
    # use the default 8192 for real DORN shapes (F = 2048 * hp * wp).
    params = prepare_encoder_params(fc_w, fc_b, conv_w, conv_b, tile_f=2048)

    out = full_image_encoder(x, params, KS)
    out = jax.block_until_ready(out)

    ref = reference(x, fc_w, fc_b, conv_w, conv_b, KS)
    assert out.shape == (B, 512, 1, 1), out.shape
    # Tolerance accounts for bf16 operands / bf16 hidden (f32 accumulation).
    assert jnp.allclose(out, ref, atol=3e-2, rtol=3e-2), "mismatch vs reference"

    print("KERNEL_OK")
</pallas_src>

<mosaic_0001>
module attributes {stable_mosaic.version = 11 : i64} {
  func.func @_fc_kernel(%arg0: i32, %arg1: i32, %arg2: memref<2x2048xbf16, #tpu.memory_space<vmem>>, %arg3: memref<2048x256xbf16, #tpu.memory_space<vmem>>, %arg4: memref<1x256xf32, #tpu.memory_space<vmem>>, %arg5: memref<2x256xbf16, #tpu.memory_space<vmem>>, %arg6: memref<2x256xf32, #tpu.memory_space<vmem>>) attributes {dimension_semantics = [#tpu.dimension_semantics<parallel>, #tpu.dimension_semantics<arbitrary>], iteration_bounds = array<i64: 2, 2>, scalar_prefetch = 0 : i64, scratch_operands = 1 : i64, tpu.core_type = #tpu.core_type<tc>, window_params = [{transform_indices = @transform_0, window_bounds = array<i64: 2, 2048>}, {transform_indices = @transform_1, window_bounds = array<i64: 2048, 256>}, {transform_indices = @transform_2, window_bounds = array<i64: 1, 256>}, {transform_indices = @transform_3, window_bounds = array<i64: 2, 256>}]} {
    %c0_i32 = arith.constant 0 : i32
    %0 = arith.cmpi eq, %arg1, %c0_i32 : i32
    %1 = arith.extui %0 : i1 to i32
    %c0_i32_0 = arith.constant 0 : i32
    %2 = arith.cmpi ne, %1, %c0_i32_0 : i32
    scf.if %2 {
      %cst_9 = arith.constant 0.000000e+00 : f32
      %12 = vector.broadcast %cst_9 : f32 to vector<2x256xf32>
      %c0_10 = arith.constant 0 : index
      %c0_11 = arith.constant 0 : index
      %13 = vector.load %arg6[%c0_10, %c0_11] : memref<2x256xf32, #tpu.memory_space<vmem>>, vector<2x256xf32>
      tpu.vector_store %arg6[%c0_10, %c0_11], %12 {strides = array<i32>} : memref<2x256xf32, #tpu.memory_space<vmem>>, vector<2x256xf32>,
    } else {
    }
    %c0 = arith.constant 0 : index
    %c0_1 = arith.constant 0 : index
    %3 = vector.load %arg6[%c0, %c0_1] : memref<2x256xf32, #tpu.memory_space<vmem>>, vector<2x256xf32>
    %c0_2 = arith.constant 0 : index
    %c0_3 = arith.constant 0 : index
    %4 = vector.load %arg2[%c0_2, %c0_3] : memref<2x2048xbf16, #tpu.memory_space<vmem>>, vector<2x2048xbf16>
    %c0_4 = arith.constant 0 : index
    %c0_5 = arith.constant 0 : index
    %5 = vector.load %arg3[%c0_4, %c0_5] : memref<2048x256xbf16, #tpu.memory_space<vmem>>, vector<2048x256xbf16>
    %cst = arith.constant dense<0.000000e+00> : vector<2x256xf32>
    %6 = tpu.matmul %4, %5, %cst {dimension_numbers = #tpu.dot_dimension_numbers<[1], [0], [0], [1], [0, 0, 1, 1], [], []>} : vector<2x2048xbf16>, vector<2048x256xbf16>, vector<2x256xf32> -> vector<2x256xf32>
    %7 = arith.addf %3, %6 : vector<2x256xf32>
    %c0_6 = arith.constant 0 : index
    %c0_7 = arith.constant 0 : index
    %8 = vector.load %arg6[%c0_6, %c0_7] : memref<2x256xf32, #tpu.memory_space<vmem>>, vector<2x256xf32>
    tpu.vector_store %arg6[%c0_6, %c0_7], %7 {strides = array<i32>} : memref<2x256xf32, #tpu.memory_space<vmem>>, vector<2x256xf32>,
    %c1_i32 = arith.constant 1 : i32
    %9 = arith.cmpi eq, %arg1, %c1_i32 : i32
    %10 = arith.extui %9 : i1 to i32
    %c0_i32_8 = arith.constant 0 : i32
    %11 = arith.cmpi ne, %10, %c0_i32_8 : i32
    scf.if %11 {
      %c0_9 = arith.constant 0 : index
      %c0_10 = arith.constant 0 : index
      %12 = vector.load %arg6[%c0_9, %c0_10] : memref<2x256xf32, #tpu.memory_space<vmem>>, vector<2x256xf32>
      %c0_11 = arith.constant 0 : index
      %c0_12 = arith.constant 0 : index
      %13 = vector.load %arg4[%c0_11, %c0_12] : memref<1x256xf32, #tpu.memory_space<vmem>>, vector<1x256xf32>
      %14 = vector.broadcast %13 : vector<1x256xf32> to vector<2x256xf32>
      %15 = arith.addf %12, %14 : vector<2x256xf32>
      %cst_13 = arith.constant 0.000000e+00 : f32
      %16 = vector.broadcast %cst_13 : f32 to vector<2x256xf32>
      %17 = arith.maximumf %15, %16 : vector<2x256xf32>
      %18 = arith.truncf %17 : vector<2x256xf32> to vector<2x256xbf16>
      %c0_14 = arith.constant 0 : index
      %c0_15 = arith.constant 0 : index
      %19 = vector.load %arg5[%c0_14, %c0_15] : memref<2x256xbf16, #tpu.memory_space<vmem>>, vector<2x256xbf16>
      tpu.vector_store %arg5[%c0_14, %c0_15], %18 {strides = array<i32>} : memref<2x256xbf16, #tpu.memory_space<vmem>>, vector<2x256xbf16>,
    } else {
    }
    return
  }
  func.func @transform_0(%arg0: i32, %arg1: i32) -> (i32, i32) {
    %c0_i32 = arith.constant 0 : i32
    %c0_i32_0 = arith.constant 0 : i32
    return %c0_i32, %arg1 : i32, i32
  }
  func.func @transform_1(%arg0: i32, %arg1: i32) -> (i32, i32) {
    %c0_i32 = arith.constant 0 : i32
    return %arg1, %arg0 : i32, i32
  }
  func.func @transform_2(%arg0: i32, %arg1: i32) -> (i32, i32) {
    %c0_i32 = arith.constant 0 : i32
    %c0_i32_0 = arith.constant 0 : i32
    return %c0_i32, %arg0 : i32, i32
  }
  func.func @transform_3(%arg0: i32, %arg1: i32) -> (i32, i32) {
    %c0_i32 = arith.constant 0 : i32
    %c0_i32_0 = arith.constant 0 : i32
    return %c0_i32, %arg0 : i32, i32
  }
}

</mosaic_0001>

<bundles_post_ra>
// kernel: tpu_custom_call.1
= control target key start
LH: loop header
LB: loop body
LE: loop exit
PB: predicated region body
PF: predicated region fallthrough
CT: control target
= control target key end

     0   :  { %s5046_s0 = inlined_call_operand.hbm [shape: bf16[2,4096], index: 0, kind: input, shape index: {}]   ;;  %s5047_s1 = inlined_call_operand.hbm [shape: bf16[4096,512], index: 1, kind: input, shape index: {}]   ;;  %s5048_s2 = inlined_call_operand.hbm [shape: f32[1,512], index: 2, kind: input, shape index: {}]   ;;  %s5049_s3 = inlined_call_operand.hbm [shape: bf16[2,512], index: 3, kind: output, shape index: {}]  }
   0x1   :  { %5057 = sst [smem:[#allocation20_spill]] %s5046_s0 }
   0x2   :  { %5058 = sst [smem:[#allocation21_spill]] %s5047_s1 }
   0x3   :  { %5059 = sst [smem:[#allocation22_spill]] %s5049_s3 }
   0x4   :  { %8 = vsyncpa [#allocation4], 0 }
   0x5   :  { %10 = vsyncpa [#allocation4 + $0x1], 0 }
   0x6   :  { %11 = vsyncpa [#allocation7], 0 }
   0x7   :  { %13 = vsyncpa [#allocation7 + $0x1], 0 }
   0x8   :  { %14 = vsyncpa [#allocation5], 0 }
   0x9   :  { %16 = vsyncpa [#allocation5 + $0x1], 0  ;;  %s4187_s12 = smov 0   ;;  %s4189_s13 = smov 0  }
   0xa   :  { %s4191_s14 = smov 0   ;;  %s4193_s15 = smov 0  }
   0xb   :  { %s4195_s16 = smov 0   ;;  %s4197_s17 = smov 0  }
   0xc   :  { %s4199_s18 = smov 0   ;;  %s4201_s19 = smov 0  }
   0xd   :  { %s4203_s20 = smov 0   ;;  %s4205_s21 = smov 0  }
   0xe   :  { %s4207_s22 = smov 0   ;;  %s4209_s23 = smov 0  }
   0xf   :  { %s4211_s24 = smov 0   ;;  %s4213_s25 = smov 0  }
  0x10 LB: > { %5060 = sst [smem:[#allocation14_spill]] %s4141_s20  ;;  %s34_s26 = sadd.s32 1, %s4157_s24  ;;  %s4161_s25 = sphi %s4213_s25, %s22_s25   ;;  %s4157_s24 = sphi %s4211_s24, %s5085_s24   ;;  %s4153_s23 = sphi %s4209_s23, %s5084_s23   ;;  %s4149_s22 = sphi %s4207_s22, %s5083_s22   ;;  %s4145_s21 = sphi %s4205_s21, %s5082_s21   ;;  %s4141_s20 = sphi %s4203_s20, %s5081_s20   ;;  %s4137_s19 = sphi %s4201_s19, %s5093_s19   ;;  %s4133_s18 = sphi %s4199_s18, %s5092_s18   ;;  %s4129_s17 = sphi %s4197_s17, %s5091_s17   ;;  %s4125_s16 = sphi %s4195_s16, %s5090_s16   ;;  %s4121_s15 = sphi %s4193_s15, %s5089_s15   ;;  %s4117_s14 = sphi %s4191_s14, %s5088_s14   ;;  %s4113_s13 = sphi %s4189_s13, %s5087_s13   ;;  %s4109_s12 = sphi %s4187_s12, %s5086_s12  }
  0x11   : > { %5061 = sst [smem:[#allocation15_spill]] %s4153_s23  ;;  %p49_p0 = scmp.eq.s32.totalorder %s4161_s25, 0 }
  0x12   : > { %5062 = sst [smem:[#allocation16_spill]] %s4157_s24  ;;  %p76_p1 = scmp.ne.s32.totalorder %s4129_s17, %s4125_s16 }
  0x13   : > { %p82_p2 = scmp.ne.s32.totalorder %s4125_s16, %s4121_s15  ;;  %p3791_p4 = scmp.lt.s32.totalorder %s4161_s25, 4 }
  0x14   : > { %p78_p3 = por %p76_p1, %p49_p0  ;;  %s177_s28 = sand.u32 1, %s4161_s25  }
  0x15   : > { %s179_s29 = sand.u32 1, %s4129_s17   ;;  %s5050_s4 = sshll.u32 %s4157_s24, 1 }
  0x16   : > { %s2470_s30 = sshll.u32 %s179_s29, 11  ;;  %s3512_s5 = sshll.u32 %s4153_s23, 10 }
  0x17   : > { %s181_s6 = scalar_lea.vmem [#allocation6], %s2470_s30  ;;  %s187_s8 = sadd.s32 %s3512_s5, %s5050_s4 }
  0x18   : > { %s192_s7 = sshll.u32 %s181_s6, 4  ;;  %s2474_s9 = sshll.u32 %s187_s8, 2  ;;  %s193_s7 = int_to_ptr.vmem [resolvable:$true] %s192_s7 }
  0x19   : > { %p3781_p5 = pnand %p3791_p4, %p78_p3  ;;  %s5063_s1 = sld [smem:[#allocation21_spill]] }
  0x1a   : > { %p2477_p6 = scmp.ge.s32.totalorder %s4161_s25, 1  ;;  %s4279_s30 = scalar_lea.sflag [#allocation7], %s177_s28 }
  0x1b   : > { %s4163_s5 = smov 256   ;;  %s4164_s6 = smov 128  }
  0x1c   : > { %s4165_s8 = smov 8   ;;  %p219_p7 = scmp.lt.s32.totalorder %s4161_s25, 5 }
  0x1d   : > { %s4288_s10 = sadd.s32 4294967295, %s4161_s25   ;;  %s31_s11 = sadd.s32 1, %s4153_s23 }
  0x1e   : > { %p4283_p8 = pnand %p2477_p6, %p219_p7  ;;  %p32_p9 = scmp.ge.s32.totalorder %s31_s11, 2 }
  0x1f   : > { %s189_s29 = scalar_lea.hbm %s5063_s1, %s2474_s9  ;;  %s41_s28 = sadd.s32 1, %s4141_s20 }
  0x20   : > { %s190_s27 = sshll.u32 %s189_s29, 4  ;;  %p48_p10 = scmp.ne.s32.totalorder %s4141_s20, %s4137_s19  ;;  %s191_s27 = int_to_ptr.hbm [resolvable:$true] %s190_s27 }
  0x21   : > { %3783 = dma.hbm_to_vmem [thread:$0]  (!%p3781_p5), %s191_s27, 32768, %s193_s7, %s4279_s30, %s4163_s5, %s4164_s6, %s4165_s8  }
  0x22   : > { %p54_p11 = scmp.ne.s32.totalorder %s4137_s19, %s4133_s18  ;;  %s5095_s11 = smov (%p32_p9, %s31_s11), 0 }
  0x23   : > { %5065 = sst [smem:[#allocation17_spill]] %s5095_s11  ;;  %s5097_s26 = smov (!%p32_p9, %s34_s26), %s4157_s24 }
  0x24   : > { %s38_s27 = ssub.s32 %s4153_s23, %s5095_s11  ;;  %p4305_p12 = por %p49_p0, %p48_p10 }
  0x25   : > { %p36_p13 = scmp.ge.s32.totalorder %s5097_s26, 2  ;;  %p39_p1 = scmp.eq.s32.totalorder %s38_s27, 0 }
  0x26   : > { %p55_p3 = scmp.eq.s32.totalorder %s4288_s10, 0  ;;  %s158_s29 = sand.u32 1, %s4141_s20  }
  0x27   : > { %s5099_s26 = smov (%p36_p13, %s5097_s26), 0  ;;  %s2469_s1 = sshll.u32 %s4153_s23, 4 }
  0x28   : > { %5067 = sst [smem:[#allocation18_spill]] %s5099_s26  ;;  %p4318_p5 = por %p55_p3, %p54_p11 }
  0x29   : > { %s4314_s18 = scalar_select %p39_p1, %s4141_s20, %s41_s28  }
  0x2a   : > { %s65_s6 = ssub.s32 %s4157_s24, %s5099_s26  ;;  %p4329_p6 = por %p82_p2, %p55_p3 }
  0x2b   : > { %5068 = sst [smem:[#allocation19_spill]] %s4314_s18  ;;  %s66_s8 = sor.u32 %s65_s6, %s38_s27 }
  0x2c   : > { %p67_p7 = scmp.eq.s32.totalorder %s66_s8, 0  ;;  %s2468_s28 = sshll.u32 %s158_s29, 4 }
  0x2d   : > { %s5071_s11 = sadd.s32 1, %s4129_s17  ;;  %s5072_s0 = sld [smem:[#allocation20_spill]] }
  0x2e   : > { %s4337_s18 = scalar_select %p67_p7, %s4129_s17, %s5071_s11  }
  0x2f   : > { %s162_s3 = scalar_lea.vmem [#allocation3], %s2468_s28  ;;  %p3778_p2 = pnand %p3791_p4, %p4305_p12 }
  0x30   : > { %s170_s8 = sshll.u32 %s162_s3, 4  ;;  %s159_s23 = scalar_lea.sflag [#allocation4], %s158_s29  ;;  %s171_s8 = int_to_ptr.vmem [resolvable:$true] %s170_s8 }
  0x31   : > { %s2465_s11 = sadd.s32 4294967294, %s4161_s25   ;;  %p93_p9 = scmp.eq.s32.totalorder %s65_s6, 0 }
  0x32   : > { %s95_s20 = sadd.s32 1, %s4117_s14  ;;  %p102_p10 = scmp.ne.s32.totalorder %s4117_s14, %s4113_s13 }
  0x33   : > { %s166_s15 = scalar_lea.hbm %s5072_s0, %s2469_s1  ;;  %p108_p13 = scmp.ne.s32.totalorder %s4113_s13, %s4109_s12 }
  0x34   : > { %s168_s27 = sshll.u32 %s166_s15, 4  ;;  %p4355_p11 = por %p102_p10, %p49_p0  ;;  %s169_s27 = int_to_ptr.hbm [resolvable:$true] %s168_s27 }
  0x35   : > { %3780 = dma.hbm_to_vmem [thread:$0]  (!%p3778_p2), %s169_s27, 256, %s171_s8, %s159_s23  }
  0x36   : > { %s4351_s26 = scalar_select %p93_p9, %s4117_s14, %s95_s20  }
  0x37   : > { %p132_p1 = scmp.eq.s32.totalorder %s4288_s10, 3  ;;  %p138_p12 = scmp.eq.s32.totalorder %s2465_s11, 3 }
  0x38   : > { %p4364_p7 = por %p108_p13, %p55_p3  ;;  %s204_s23 = sand.u32 1, %s4117_s14  }
  0x39   : > { %p4369_p2 = por %p132_p1, %p102_p10  ;;  %p4373_p9 = por %p138_p12, %p108_p13 }
  0x3a   : > { %s2475_s6 = sshll.u32 %s204_s23, 1  ;;  %s5077_s28 = sshll.u32 %s4157_s24, 1 }
  0x3b   : > { %s210_s8 = scalar_lea.hbm %s5048_s2, %s5077_s28  ;;  %s206_s20 = scalar_lea.vmem [#allocation8], %s2475_s6 }
  0x3c   : > { %s212_s11 = sshll.u32 %s210_s8, 4  ;;  %s214_s0 = sshll.u32 %s206_s20, 4  ;;  %s213_s11 = int_to_ptr.hbm [resolvable:$true] %s212_s11  ;;  %s215_s0 = int_to_ptr.vmem [resolvable:$true] %s214_s0 }
  0x3d   : > { %p3784_p0 = pnand %p3791_p4, %p4355_p11  ;;  %223 = sbr.rel (%p4283_p8) target bundleno = 531 (0x213), region = 32 }
  0x3e   : > { %s225_s23 = sand.u32 (!%p4283_p8), 1, %s4137_s19  }
  0x3f   : > { %3786 = dma.hbm_to_vmem [thread:$0]  (!%p3784_p0), %s213_s11, 32, %s215_s0, %s4279_s30  }
  0x40   : > { %s4390_s24 = sshll.u32 (!%p4283_p8), %s225_s23, 4  ;;  %s226_s15 = scalar_lea.sflag (!%p4283_p8), [#allocation4], %s225_s23 }
  0x41   : > { %s229_s28 = scalar_lea.vmem (!%p4283_p8), [#allocation3], %s4390_s24 }
  0x42   : > { %4092 = dma.done.wait (%p4318_p5), %s226_s15, 256  }
  0x43   : > { %4094 = vsyncadd (%p4318_p5), %s226_s15, 4294967040  ;;  %s235_s0 = sand.u32 1, %s4288_s10   ;;  %s237_s30 = sand.u32 1, %s4125_s16  }
  0x44   : > { %s2479_s9 = sshll.u32 %s237_s30, 11  ;;  %s236_s1 = scalar_lea.sflag [#allocation7], %s235_s0 }
  0x45   : > { %s4399_s6 = scalar_lea.vmem [#allocation6], %s2479_s9 }
  0x46   : > { %4096 = dma.done.wait (%p4329_p6), %s236_s1, 32768  }
  0x47   : > { %4098 = vsyncadd (%p4329_p6), %s236_s1, 4294934528  ;;  %s247_s27 = sand.u32 1, %s4113_s13  }
  0x48   : > { %s4408_s5 = sshll.u32 %s247_s27, 1 }
  0x49   : > { %s249_s8 = scalar_lea.vmem [#allocation8], %s4408_s5 }
  0x4a   : > { %4100 = dma.done.wait (%p4364_p7), %s236_s1, 32  }
  0x4b   : > { %4102 = vsyncadd (%p4364_p7), %s236_s1, 4294967264  ;;  %s282_s10 = scalar_lea.vmem [#allocation9], %s4408_s5  ;;  %p2482_p4 = scmp.ne.s32.totalorder %s4145_s21, 0 }
  0x4d   : > { %291 = sbr.rel (%p2482_p4) target bundleno = 84 (0x54), region = 48 }
  0x52   : > { %v4166_v0 = vmov 0.0  }
  0x53   : > { %292 = vst [vmem:[#allocation2] sm:$0xf] %v4166_v0 }
  0x54 PF: > { %v2541_v1 = vld [vmem:[%s4399_s6 + $0x70] sm:$0xf]  ;;  %v3528_v2 = vld [vmem:[%s4399_s6 + $0x74] sm:$0xf0]  ;;  %v2533_v12 = vld [vmem:[%s4399_s6 + $0x60] sm:$0xf] }
  0x55   : > { %v2605_v3 = vld [vmem:[%s4399_s6 + $0xf0] sm:$0xf]  ;;  %v2542_v4 = vor.u32 %v3528_v2, %v2541_v1  ;;  %v3544_v5 = vld [vmem:[%s4399_s6 + $0xf4] sm:$0xf0]  ;;  %v3526_v14 = vld [vmem:[%s4399_s6 + $0x64] sm:$0xf0] }
  0x56   : > { %v2669_v6 = vld [vmem:[%s4399_s6 + $0x170] sm:$0xf]  ;;  %v3560_v7 = vld [vmem:[%s4399_s6 + $0x174] sm:$0xf0]  ;;  %v2606_v8 = vor.u32 %v3544_v5, %v2605_v3  ;;  %v2597_v15 = vld [vmem:[%s4399_s6 + $0xe0] sm:$0xf]  ;;  %v2534_v17 = vor.u32 %v3526_v14, %v2533_v12 }
  0x57   : > { %v2670_v9 = vor.u32 %v3560_v7, %v2669_v6  ;;  %v2733_v10 = vld [vmem:[%s4399_s6 + $0x1f0] sm:$0xf]  ;;  %v3576_v11 = vld [vmem:[%s4399_s6 + $0x1f4] sm:$0xf0]  ;;  %1868 = vmatpush.bf16.msra.mxu0 %v2542_v4  ;;  %v3542_v16 = vld [vmem:[%s4399_s6 + $0xe4] sm:$0xf0] }
  0x58   : > { %v2734_v13 = vor.u32 %v3576_v11, %v2733_v10  ;;  %1881 = vmatpush.bf16.msra.mxu1 %v2606_v8  ;;  %v2598_v18 = vor.u32 %v3542_v16, %v2597_v15  ;;  %v2661_v19 = vld [vmem:[%s4399_s6 + $0x160] sm:$0xf]  ;;  %v3558_v20 = vld [vmem:[%s4399_s6 + $0x164] sm:$0xf0]  ;;  %v2525_v24 = vld [vmem:[%s4399_s6 + $0x50] sm:$0xf] }
  0x59   : > { %1894 = vmatpush.bf16.msra.mxu2 %v2670_v9  ;;  %v2725_v21 = vld [vmem:[%s4399_s6 + $0x1e0] sm:$0xf]  ;;  %v2662_v22 = vor.u32 %v3558_v20, %v2661_v19  ;;  %v3574_v23 = vld [vmem:[%s4399_s6 + $0x1e4] sm:$0xf0]  ;;  %v3524_v25 = vld [vmem:[%s4399_s6 + $0x54] sm:$0xf0] }
  0x5a   : > { %1907 = vmatpush.bf16.msra.mxu3 %v2734_v13  ;;  %v2726_v26 = vor.u32 %v3574_v23, %v2725_v21  ;;  %v2589_v27 = vld [vmem:[%s4399_s6 + $0xd0] sm:$0xf]  ;;  %v3540_v28 = vld [vmem:[%s4399_s6 + $0xd4] sm:$0xf0]  ;;  %v2526_v30 = vor.u32 %v3524_v25, %v2525_v24  ;;  %v2517_v36 = vld [vmem:[%s4399_s6 + $0x40] sm:$0xf] }
  0x5b   : > { %v2653_v29 = vld [vmem:[%s4399_s6 + $0x150] sm:$0xf]  ;;  %1869 = vmatpush.bf16.msra.mxu0 %v2534_v17  ;;  %v3556_v31 = vld [vmem:[%s4399_s6 + $0x154] sm:$0xf0]  ;;  %v2590_v34 = vor.u32 %v3540_v28, %v2589_v27  ;;  %v3522_v37 = vld [vmem:[%s4399_s6 + $0x44] sm:$0xf0] }
  0x5c   : > { %v2717_v32 = vld [vmem:[%s4399_s6 + $0x1d0] sm:$0xf]  ;;  %v3572_v33 = vld [vmem:[%s4399_s6 + $0x1d4] sm:$0xf0]  ;;  %1882 = vmatpush.bf16.msra.mxu1 %v2598_v18  ;;  %v2654_v35 = vor.u32 %v3556_v31, %v2653_v29  ;;  %v2581_v38 = vld [vmem:[%s4399_s6 + $0xc0] sm:$0xf]  ;;  %v2518_v45 = vor.u32 %v3522_v37, %v2517_v36 }
  0x5d   : > { %1895 = vmatpush.bf16.msra.mxu2 %v2662_v22  ;;  %v2718_v39 = vor.u32 %v3572_v33, %v2717_v32  ;;  %v3538_v40 = vld [vmem:[%s4399_s6 + $0xc4] sm:$0xf0]  ;;  %v2645_v41 = vld [vmem:[%s4399_s6 + $0x140] sm:$0xf]  ;;  %v2509_v48 = vld [vmem:[%s4399_s6 + $0x30] sm:$0xf] }
  0x5e   : > { %1908 = vmatpush.bf16.msra.mxu3 %v2726_v26  ;;  %v3554_v42 = vld [vmem:[%s4399_s6 + $0x144] sm:$0xf0]  ;;  %v2709_v43 = vld [vmem:[%s4399_s6 + $0x1c0] sm:$0xf]  ;;  %v2582_v46 = vor.u32 %v3538_v40, %v2581_v38  ;;  %v3520_v49 = vld [vmem:[%s4399_s6 + $0x34] sm:$0xf0] }
  0x5f   : > { %v3570_v44 = vld [vmem:[%s4399_s6 + $0x1c4] sm:$0xf0]  ;;  %1870 = vmatpush.bf16.msra.mxu0 %v2526_v30  ;;  %v2646_v47 = vor.u32 %v3554_v42, %v2645_v41  ;;  %v2573_v50 = vld [vmem:[%s4399_s6 + $0xb0] sm:$0xf]  ;;  %v3536_v52 = vld [vmem:[%s4399_s6 + $0xb4] sm:$0xf0]  ;;  %v2510_v57 = vor.u32 %v3520_v49, %v2509_v48 }
  0x60   : > { %1883 = vmatpush.bf16.msra.mxu1 %v2590_v34  ;;  %v2710_v51 = vor.u32 %v3570_v44, %v2709_v43  ;;  %v2637_v53 = vld [vmem:[%s4399_s6 + $0x130] sm:$0xf]  ;;  %v3552_v54 = vld [vmem:[%s4399_s6 + $0x134] sm:$0xf0]  ;;  %v2574_v58 = vor.u32 %v3536_v52, %v2573_v50  ;;  %v2501_v60 = vld [vmem:[%s4399_s6 + $0x20] sm:$0xf] }
  0x61   : > { %1896 = vmatpush.bf16.msra.mxu2 %v2654_v35  ;;  %v2701_v55 = vld [vmem:[%s4399_s6 + $0x1b0] sm:$0xf]  ;;  %v3568_v56 = vld [vmem:[%s4399_s6 + $0x1b4] sm:$0xf0]  ;;  %v2638_v59 = vor.u32 %v3552_v54, %v2637_v53  ;;  %v3518_v61 = vld [vmem:[%s4399_s6 + $0x24] sm:$0xf0] }
  0x62   : > { %1909 = vmatpush.bf16.msra.mxu3 %v2718_v39  ;;  %v2565_v62 = vld [vmem:[%s4399_s6 + $0xa0] sm:$0xf]  ;;  %v2702_v63 = vor.u32 %v3568_v56, %v2701_v55  ;;  %v3534_v0 = vld [vmem:[%s4399_s6 + $0xa4] sm:$0xf0]  ;;  %v2502_v5 = vor.u32 %v3518_v61, %v2501_v60  ;;  %v2493_v8 = vld [vmem:[%s4399_s6 + $0x10] sm:$0xf] }
  0x63   : > { %1871 = vmatpush.bf16.msra.mxu0 %v2518_v45  ;;  %v2629_v1 = vld [vmem:[%s4399_s6 + $0x120] sm:$0xf]  ;;  %v3550_v2 = vld [vmem:[%s4399_s6 + $0x124] sm:$0xf0]  ;;  %v2566_v6 = vor.u32 %v3534_v0, %v2565_v62  ;;  %v3516_v9 = vld [vmem:[%s4399_s6 + $0x14] sm:$0xf0] }
  0x64   : > { %1884 = vmatpush.bf16.msra.mxu1 %v2582_v46  ;;  %v2693_v3 = vld [vmem:[%s4399_s6 + $0x1a0] sm:$0xf]  ;;  %v3566_v4 = vld [vmem:[%s4399_s6 + $0x1a4] sm:$0xf0]  ;;  %v2630_v7 = vor.u32 %v3550_v2, %v2629_v1  ;;  %v2557_v10 = vld [vmem:[%s4399_s6 + $0x90] sm:$0xf]  ;;  %v2494_v17 = vor.u32 %v3516_v9, %v2493_v8 }
  0x65   : > { %1897 = vmatpush.bf16.msra.mxu2 %v2646_v47  ;;  %v2694_v11 = vor.u32 %v3566_v4, %v2693_v3  ;;  %v3532_v12 = vld [vmem:[%s4399_s6 + $0x94] sm:$0xf0]  ;;  %v2621_v13 = vld [vmem:[%s4399_s6 + $0x110] sm:$0xf]  ;;  %v2485_v18 = vld [vmem:[%s4399_s6] sm:$0xf] }
  0x66   : > { %1910 = vmatpush.bf16.msra.mxu3 %v2710_v51  ;;  %v3548_v14 = vld [vmem:[%s4399_s6 + $0x114] sm:$0xf0]  ;;  %v2685_v15 = vld [vmem:[%s4399_s6 + $0x190] sm:$0xf]  ;;  %v3514_v19 = vld [vmem:[%s4399_s6 + $0x4] sm:$0xf0]  ;;  %v2558_v20 = vor.u32 %v3532_v12, %v2557_v10 }
  0x67   : > { %1872 = vmatpush.bf16.msra.mxu0 %v2510_v57  ;;  %v3564_v16 = vld [vmem:[%s4399_s6 + $0x194] sm:$0xf0]  ;;  %v2622_v21 = vor.u32 %v3548_v14, %v2621_v13  ;;  %v2549_v22 = vld [vmem:[%s4399_s6 + $0x80] sm:$0xf]  ;;  %v3530_v23 = vld [vmem:[%s4399_s6 + $0x84] sm:$0xf0]  ;;  %v2486_v32 = vor.u32 %v3514_v19, %v2485_v18 }
  0x68   : > { %1885 = vmatpush.bf16.msra.mxu1 %v2574_v58  ;;  %v2613_v24 = vld [vmem:[%s4399_s6 + $0x100] sm:$0xf]  ;;  %v2686_v25 = vor.u32 %v3564_v16, %v2685_v15  ;;  %v3546_v26 = vld [vmem:[%s4399_s6 + $0x104] sm:$0xf0]  ;;  %v2797_v29 = vld [vmem:[%s4399_s6 + $0x270] sm:$0xf]  ;;  %v2550_v36 = vor.u32 %v3530_v23, %v2549_v22 }
  0x69   : > { %1898 = vmatpush.bf16.msra.mxu2 %v2638_v59  ;;  %v2677_v27 = vld [vmem:[%s4399_s6 + $0x180] sm:$0xf]  ;;  %v3562_v28 = vld [vmem:[%s4399_s6 + $0x184] sm:$0xf0]  ;;  %v3592_v30 = vld [vmem:[%s4399_s6 + $0x274] sm:$0xf0]  ;;  %v2614_v37 = vor.u32 %v3546_v26, %v2613_v24 }
  0x6a   : > { %1911 = vmatpush.bf16.msra.mxu3 %v2702_v63  ;;  %v2861_v31 = vld [vmem:[%s4399_s6 + $0x2f0] sm:$0xf]  ;;  %v3608_v33 = vld [vmem:[%s4399_s6 + $0x2f4] sm:$0xf0]  ;;  %v2678_v40 = vor.u32 %v3562_v28, %v2677_v27  ;;  %v2798_v41 = vor.u32 %v3592_v30, %v2797_v29  ;;  %v2789_v44 = vld [vmem:[%s4399_s6 + $0x260] sm:$0xf] }
  0x6b   : > { %1873 = vmatpush.bf16.msra.mxu0 %v2502_v5  ;;  %v2925_v34 = vld [vmem:[%s4399_s6 + $0x370] sm:$0xf]  ;;  %v3624_v35 = vld [vmem:[%s4399_s6 + $0x374] sm:$0xf0]  ;;  %v2862_v42 = vor.u32 %v3608_v33, %v2861_v31  ;;  %v3590_v45 = vld [vmem:[%s4399_s6 + $0x264] sm:$0xf0] }
  0x6c   : > { %1886 = vmatpush.bf16.msra.mxu1 %v2566_v6  ;;  %v2989_v38 = vld [vmem:[%s4399_s6 + $0x3f0] sm:$0xf]  ;;  %v3640_v39 = vld [vmem:[%s4399_s6 + $0x3f4] sm:$0xf0]  ;;  %v2926_v43 = vor.u32 %v3624_v35, %v2925_v34  ;;  %v2853_v46 = vld [vmem:[%s4399_s6 + $0x2e0] sm:$0xf]  ;;  %v2790_v53 = vor.u32 %v3590_v45, %v2789_v44 }
  0x6d   : > { %1899 = vmatpush.bf16.msra.mxu2 %v2630_v7  ;;  %v2990_v47 = vor.u32 %v3640_v39, %v2989_v38  ;;  %v3606_v48 = vld [vmem:[%s4399_s6 + $0x2e4] sm:$0xf0]  ;;  %v2917_v49 = vld [vmem:[%s4399_s6 + $0x360] sm:$0xf]  ;;  %v2781_v54 = vld [vmem:[%s4399_s6 + $0x250] sm:$0xf] }
  0x6e   : > { %1912 = vmatpush.bf16.msra.mxu3 %v2694_v11  ;;  %v3622_v50 = vld [vmem:[%s4399_s6 + $0x364] sm:$0xf0]  ;;  %v2981_v51 = vld [vmem:[%s4399_s6 + $0x3e0] sm:$0xf]  ;;  %v3588_v55 = vld [vmem:[%s4399_s6 + $0x254] sm:$0xf0]  ;;  %v2854_v56 = vor.u32 %v3606_v48, %v2853_v46 }
  0x6f   : > { %1874 = vmatpush.bf16.msra.mxu0 %v2494_v17  ;;  %v3638_v52 = vld [vmem:[%s4399_s6 + $0x3e4] sm:$0xf0]  ;;  %v2918_v57 = vor.u32 %v3622_v50, %v2917_v49  ;;  %v2845_v58 = vld [vmem:[%s4399_s6 + $0x2d0] sm:$0xf]  ;;  %v3604_v59 = vld [vmem:[%s4399_s6 + $0x2d4] sm:$0xf0]  ;;  %v2782_v2 = vor.u32 %v3588_v55, %v2781_v54 }
  0x70   : > { %1887 = vmatpush.bf16.msra.mxu1 %v2558_v20  ;;  %v294_v60 = vld [vmem:[%s229_s28] sm:$0xff]  ;;  %v2982_v61 = vor.u32 %v3638_v52, %v2981_v51  ;;  %v3620_v63 = vld [vmem:[%s4399_s6 + $0x354] sm:$0xf0]  ;;  %v2846_v3 = vor.u32 %v3604_v59, %v2845_v58  ;;  %v3586_v6 = vld [vmem:[%s4399_s6 + $0x244] sm:$0xf0]  ;;  %vm2287_vm0 = vcmask 1041408  }
  0x71   : > { %1900 = vmatpush.bf16.msra.mxu2 %v2622_v21  ;;  %v2909_v62 = vld [vmem:[%s4399_s6 + $0x350] sm:$0xf]  ;;  %553 = vst [vmem:[#allocation1] ss:$9 sm:$0xff] %v294_v60  ;;  %v3636_v1 = vld [vmem:[%s4399_s6 + $0x3d4] sm:$0xf0] }
  0x72   : > { %1913 = vmatpush.bf16.msra.mxu3 %v2686_v25  ;;  %v2973_v0 = vld [vmem:[%s4399_s6 + $0x3d0] sm:$0xf]  ;;  %v2910_v4 = vor.u32 %v3620_v63, %v2909_v62  ;;  %v2773_v5 = vld [vmem:[%s4399_s6 + $0x240] sm:$0xf]  ;;  %v3602_v9 = vld [vmem:[%s4399_s6 + $0x2c4] sm:$0xf0] }
  0x73   : > { %1875 = vmatpush.bf16.msra.mxu0 %v2486_v32  ;;  %v2837_v7 = vld [vmem:[%s4399_s6 + $0x2c0] sm:$0xf]  ;;  %v2974_v8 = vor.u32 %v3636_v1, %v2973_v0  ;;  %v3618_v11 = vld [vmem:[%s4399_s6 + $0x344] sm:$0xf0]  ;;  %v2765_v14 = vld [vmem:[%s4399_s6 + $0x230] sm:$0xf]  ;;  %v2774_v15 = vor.u32 %v3586_v6, %v2773_v5 }
  0x74   : > { %1888 = vmatpush.bf16.msra.mxu1 %v2550_v36  ;;  %v2901_v10 = vld [vmem:[%s4399_s6 + $0x340] sm:$0xf]  ;;  %v3634_v13 = vld [vmem:[%s4399_s6 + $0x3c4] sm:$0xf0]  ;;  %v3584_v16 = vld [vmem:[%s4399_s6 + $0x234] sm:$0xf0]  ;;  %v2838_v19 = vor.u32 %v3602_v9, %v2837_v7 }
  0x75   : > { %1901 = vmatpush.bf16.msra.mxu2 %v2614_v37  ;;  %v2965_v12 = vld [vmem:[%s4399_s6 + $0x3c0] sm:$0xf]  ;;  %v2829_v17 = vld [vmem:[%s4399_s6 + $0x2b0] sm:$0xf]  ;;  %v3600_v18 = vld [vmem:[%s4399_s6 + $0x2b4] sm:$0xf0]  ;;  %v2902_v20 = vor.u32 %v3618_v11, %v2901_v10  ;;  %v2766_v30 = vor.u32 %v3584_v16, %v2765_v14 }
  0x76   : > { %1914 = vmatpush.bf16.msra.mxu3 %v2678_v40  ;;  %v2966_v24 = vor.u32 %v3634_v13, %v2965_v12  ;;  %v2893_v25 = vld [vmem:[%s4399_s6 + $0x330] sm:$0xf]  ;;  %v3616_v26 = vld [vmem:[%s4399_s6 + $0x334] sm:$0xf0]  ;;  %v2830_v31 = vor.u32 %v3600_v18, %v2829_v17  ;;  %v2757_v33 = vld [vmem:[%s4399_s6 + $0x220] sm:$0xf] }
  0x77   : > { %1920 = vmatpush.bf16.msrb.mxu0 %v2798_v41  ;;  %v2957_v28 = vld [vmem:[%s4399_s6 + $0x3b0] sm:$0xf]  ;;  %v3632_v29 = vld [vmem:[%s4399_s6 + $0x3b4] sm:$0xf0]  ;;  %v2894_v32 = vor.u32 %v3616_v26, %v2893_v25  ;;  %v3582_v34 = vld [vmem:[%s4399_s6 + $0x224] sm:$0xf0] }
  0x78   : > { %1933 = vmatpush.bf16.msrb.mxu1 %v2862_v42  ;;  %v4519_v21 = vld [vmem:[#allocation1 + $0x12] sm:$0xff]  ;;  %v4521_v22 = vld [vmem:[#allocation1] sm:$0xff]  ;;  %v4528_v27 = vld [vmem:[#allocation1 + $0x9] sm:$0xff]  ;;  %v2958_v36 = vor.u32 %v3632_v29, %v2957_v28  ;;  %v2758_v42 = vor.u32 %v3582_v34, %v2757_v33  ;;  %p3507_p8 = scmp.ne.s32.totalorder %s4145_s21, 1 }
  0x79   : > { %1946 = vmatpush.bf16.msrb.mxu2 %v2926_v43  ;;  %v4523_v23 = vld [vmem:[#allocation1 + $0x1b] sm:$0xff]  ;;  %1876 = vmatmul.bf16.vlgmr.msra.gmra.mxu0 %v4521_v22  ;;  %v2821_v35 = vld [vmem:[%s4399_s6 + $0x2a0] sm:$0xf]  ;;  %v3598_v37 = vld [vmem:[%s4399_s6 + $0x2a4] sm:$0xf0] }
  0x7a   : > { %1959 = vmatpush.bf16.msrb.mxu3 %v2990_v47  ;;  %1902 = vmatmul.bf16.vlgmr.msra.gmra.mxu2 %v4519_v21  ;;  %v2885_v38 = vld [vmem:[%s4399_s6 + $0x320] sm:$0xf]  ;;  %v3614_v39 = vld [vmem:[%s4399_s6 + $0x324] sm:$0xf0]  ;;  %v2749_v43 = vld [vmem:[%s4399_s6 + $0x210] sm:$0xf]  ;;  %v2822_v44 = vor.u32 %v3598_v37, %v2821_v35 }
  0x7b   : > { %1921 = vmatpush.bf16.msrb.mxu0 %v2790_v53  ;;  %1915 = vmatmul.bf16.vlgmr.msra.gmra.mxu3 %v4523_v23  ;;  %v2949_v40 = vld [vmem:[%s4399_s6 + $0x3a0] sm:$0xf]  ;;  %v3630_v41 = vld [vmem:[%s4399_s6 + $0x3a4] sm:$0xf0]  ;;  %v2886_v45 = vor.u32 %v3614_v39, %v2885_v38  ;;  %v3580_v46 = vld [vmem:[%s4399_s6 + $0x214] sm:$0xf0] }
  0x7c   : > { %1934 = vmatpush.bf16.msrb.mxu1 %v2854_v56  ;;  %v2813_v47 = vld [vmem:[%s4399_s6 + $0x290] sm:$0xf]  ;;  %v3596_v48 = vld [vmem:[%s4399_s6 + $0x294] sm:$0xf0]  ;;  %v2950_v49 = vor.u32 %v3630_v41, %v2949_v40  ;;  %v2741_v54 = vld [vmem:[%s4399_s6 + $0x200] sm:$0xf]  ;;  %v2750_v56 = vor.u32 %v3580_v46, %v2749_v43 }
  0x7d   : > { %1947 = vmatpush.bf16.msrb.mxu2 %v2918_v57  ;;  %1889 = vmatmul.bf16.vlgmr.msra.gmra.mxu1 %v4528_v27  ;;  %v2877_v50 = vld [vmem:[%s4399_s6 + $0x310] sm:$0xf]  ;;  %v3612_v51 = vld [vmem:[%s4399_s6 + $0x314] sm:$0xf0]  ;;  %v3578_v55 = vld [vmem:[%s4399_s6 + $0x204] sm:$0xf0]  ;;  %v2814_v63 = vor.u32 %v3596_v48, %v2813_v47 }
  0x7e   : > { %1960 = vmatpush.bf16.msrb.mxu3 %v2982_v61  ;;  %v2941_v52 = vld [vmem:[%s4399_s6 + $0x390] sm:$0xf]  ;;  %v3628_v53 = vld [vmem:[%s4399_s6 + $0x394] sm:$0xf0]  ;;  %v2805_v57 = vld [vmem:[%s4399_s6 + $0x280] sm:$0xf]  ;;  %v2878_v0 = vor.u32 %v3612_v51, %v2877_v50  ;;  %v2742_v10 = vor.u32 %v3578_v55, %v2741_v54 }
  0x7f   : > { %1922 = vmatpush.bf16.msrb.mxu0 %v2782_v2  ;;  %v3594_v58 = vld [vmem:[%s4399_s6 + $0x284] sm:$0xf0]  ;;  %v2869_v59 = vld [vmem:[%s4399_s6 + $0x300] sm:$0xf]  ;;  %v4561_v1 = vld [vmem:[#allocation1 + $0x24] sm:$0xff] }
  0x80   : > { %1935 = vmatpush.bf16.msrb.mxu1 %v2846_v3  ;;  %v3610_v60 = vld [vmem:[%s4399_s6 + $0x304] sm:$0xf0]  ;;  %v4563_v2 = vld [vmem:[#allocation1 + $0x3f] sm:$0xff]  ;;  %v2933_v5 = vld [vmem:[%s4399_s6 + $0x380] sm:$0xf]  ;;  %v2806_v14 = vor.u32 %v3594_v58, %v2805_v57 }
  0x81   : > { %1948 = vmatpush.bf16.msrb.mxu2 %v2910_v4  ;;  %v4557_v61 = vld [vmem:[#allocation1 + $0x36] sm:$0xff]  ;;  %v4565_v3 = vld [vmem:[#allocation1 + $0x2d] sm:$0xff]  ;;  %v2942_v4 = vor.u32 %v3628_v53, %v2941_v52  ;;  %v3672_v11 = vld [vmem:[%s4399_s6 + $0x4f4] sm:$0xf0] }
  0x82   : > { %1961 = vmatpush.bf16.msrb.mxu3 %v2974_v8  ;;  %v295_v62 = vld [vmem:[%s229_s28 + $0x8] sm:$0xff]  ;;  %v3053_v7 = vld [vmem:[%s4399_s6 + $0x470] sm:$0xf]  ;;  %v3045_v25 = vld [vmem:[%s4399_s6 + $0x460] sm:$0xf] }
  0x83   : > { %1923 = vmatpush.bf16.msrb.mxu0 %v2774_v15  ;;  %v3626_v6 = vld [vmem:[%s4399_s6 + $0x384] sm:$0xf0]  ;;  %563 = vst [vmem:[#allocation1] ss:$9 sm:$0xff] %v295_v62  ;;  %v3656_v8 = vld [vmem:[%s4399_s6 + $0x474] sm:$0xf0]  ;;  %v2870_v15 = vor.u32 %v3610_v60, %v2869_v59 }
  0x84   : > { %1936 = vmatpush.bf16.msrb.mxu1 %v2838_v19  ;;  %v3117_v9 = vld [vmem:[%s4399_s6 + $0x4f0] sm:$0xf]  ;;  %v3688_v13 = vld [vmem:[%s4399_s6 + $0x574] sm:$0xf0]  ;;  %v2934_v18 = vor.u32 %v3626_v6, %v2933_v5  ;;  %v3054_v19 = vor.u32 %v3656_v8, %v3053_v7  ;;  %v3654_v26 = vld [vmem:[%s4399_s6 + $0x464] sm:$0xf0] }
  0x85   : > { %1949 = vmatpush.bf16.msrb.mxu2 %v2902_v20  ;;  %v3181_v12 = vld [vmem:[%s4399_s6 + $0x570] sm:$0xf]  ;;  %v3704_v17 = vld [vmem:[%s4399_s6 + $0x5f4] sm:$0xf0]  ;;  %v3118_v20 = vor.u32 %v3672_v11, %v3117_v9  ;;  %v3109_v28 = vld [vmem:[%s4399_s6 + $0x4e0] sm:$0xf]  ;;  %v3046_v35 = vor.u32 %v3654_v26, %v3045_v25 }
  0x86   : > { %1962 = vmatpush.bf16.msrb.mxu3 %v2966_v24  ;;  %v3245_v16 = vld [vmem:[%s4399_s6 + $0x5f0] sm:$0xf]  ;;  %v3182_v24 = vor.u32 %v3688_v13, %v3181_v12  ;;  %v3237_v33 = vld [vmem:[%s4399_s6 + $0x5e0] sm:$0xf]  ;;  %v3702_v34 = vld [vmem:[%s4399_s6 + $0x5e4] sm:$0xf0] }
  0x87   : > { %1924 = vmatpush.bf16.msrb.mxu0 %v2766_v30  ;;  %v3246_v29 = vor.u32 %v3704_v17, %v3245_v16  ;;  %v3670_v30 = vld [vmem:[%s4399_s6 + $0x4e4] sm:$0xf0]  ;;  %v3037_v38 = vld [vmem:[%s4399_s6 + $0x450] sm:$0xf]  ;;  %v3652_v39 = vld [vmem:[%s4399_s6 + $0x454] sm:$0xf0]  ;;  %v3238_v41 = vor.u32 %v3702_v34, %v3237_v33 }
  0x88   : > { %1937 = vmatpush.bf16.msrb.mxu1 %v2830_v31  ;;  %v3173_v31 = vld [vmem:[%s4399_s6 + $0x560] sm:$0xf]  ;;  %v3101_v40 = vld [vmem:[%s4399_s6 + $0x4d0] sm:$0xf]  ;;  %v3700_v46 = vld [vmem:[%s4399_s6 + $0x5d4] sm:$0xf0]  ;;  %v3038_v47 = vor.u32 %v3652_v39, %v3037_v38 }
  0x89   : > { %1950 = vmatpush.bf16.msrb.mxu2 %v2894_v32  ;;  %v3686_v32 = vld [vmem:[%s4399_s6 + $0x564] sm:$0xf0]  ;;  %v3165_v43 = vld [vmem:[%s4399_s6 + $0x550] sm:$0xf]  ;;  %v3029_v50 = vld [vmem:[%s4399_s6 + $0x440] sm:$0xf] }
  0x8a   : > { %1963 = vmatpush.bf16.msrb.mxu3 %v2958_v36  ;;  %v3110_v36 = vor.u32 %v3670_v30, %v3109_v28  ;;  %v3174_v37 = vor.u32 %v3686_v32, %v3173_v31  ;;  %v3650_v51 = vld [vmem:[%s4399_s6 + $0x444] sm:$0xf0]  ;;  %v3093_v52 = vld [vmem:[%s4399_s6 + $0x4c0] sm:$0xf]  ;;  %v3664_v6 = vld [vmem:[%s4399_s6 + $0x4b4] sm:$0xf0] }
  0x8b   : > { %1925 = vmatpush.bf16.msrb.mxu0 %v2758_v42  ;;  %v3668_v42 = vld [vmem:[%s4399_s6 + $0x4d4] sm:$0xf0]  ;;  %v3666_v54 = vld [vmem:[%s4399_s6 + $0x4c4] sm:$0xf0]  ;;  %v3157_v55 = vld [vmem:[%s4399_s6 + $0x540] sm:$0xf]  ;;  %v3030_v59 = vor.u32 %v3650_v51, %v3029_v50 }
  0x8c   : > { %1938 = vmatpush.bf16.msrb.mxu1 %v2822_v44  ;;  %v3684_v44 = vld [vmem:[%s4399_s6 + $0x554] sm:$0xf0]  ;;  %v3102_v48 = vor.u32 %v3668_v42, %v3101_v40  ;;  %v3221_v57 = vld [vmem:[%s4399_s6 + $0x5c0] sm:$0xf]  ;;  %v3698_v58 = vld [vmem:[%s4399_s6 + $0x5c4] sm:$0xf0]  ;;  %v3094_v60 = vor.u32 %v3666_v54, %v3093_v52 }
  0x8d   : > { %1951 = vmatpush.bf16.msrb.mxu2 %v2886_v45  ;;  %v3229_v45 = vld [vmem:[%s4399_s6 + $0x5d0] sm:$0xf]  ;;  %v3222_v5 = vor.u32 %v3698_v58, %v3221_v57  ;;  %v3680_v8 = vld [vmem:[%s4399_s6 + $0x534] sm:$0xf0]  ;;  %v3077_v16 = vld [vmem:[%s4399_s6 + $0x4a0] sm:$0xf] }
  0x8e   : > { %1964 = vmatpush.bf16.msrb.mxu3 %v2950_v49  ;;  %v3166_v49 = vor.u32 %v3684_v44, %v3165_v43  ;;  %v3230_v53 = vor.u32 %v3700_v46, %v3229_v45  ;;  %v3149_v7 = vld [vmem:[%s4399_s6 + $0x530] sm:$0xf]  ;;  %v3694_v25 = vld [vmem:[%s4399_s6 + $0x5a4] sm:$0xf0]  ;;  %v3644_v31 = vld [vmem:[%s4399_s6 + $0x414] sm:$0xf0] }
  0x8f   : > { %1926 = vmatpush.bf16.msrb.mxu0 %v2750_v56  ;;  %v3682_v56 = vld [vmem:[%s4399_s6 + $0x544] sm:$0xf0]  ;;  %v3213_v9 = vld [vmem:[%s4399_s6 + $0x5b0] sm:$0xf]  ;;  %v3150_v13 = vor.u32 %v3680_v8, %v3149_v7  ;;  %v3660_v34 = vld [vmem:[%s4399_s6 + $0x494] sm:$0xf0] }
  0x90   : > { %1939 = vmatpush.bf16.msrb.mxu1 %v2814_v63  ;;  %v3158_v62 = vor.u32 %v3682_v56, %v3157_v55  ;;  %v3021_v63 = vld [vmem:[%s4399_s6 + $0x430] sm:$0xf]  ;;  %v3692_v38 = vld [vmem:[%s4399_s6 + $0x594] sm:$0xf0]  ;;  %v2997_v40 = vld [vmem:[%s4399_s6 + $0x400] sm:$0xf] }
  0x91   : > { %1952 = vmatpush.bf16.msrb.mxu2 %v2878_v0  ;;  %v3648_v0 = vld [vmem:[%s4399_s6 + $0x434] sm:$0xf0]  ;;  %v3005_v30 = vld [vmem:[%s4399_s6 + $0x410] sm:$0xf]  ;;  %v3061_v44 = vld [vmem:[%s4399_s6 + $0x480] sm:$0xf] }
  0x92   : > { %1965 = vmatpush.bf16.msrb.mxu3 %v2942_v4  ;;  %v3085_v4 = vld [vmem:[%s4399_s6 + $0x4b0] sm:$0xf]  ;;  %v3022_v11 = vor.u32 %v3648_v0, %v3021_v63  ;;  %v3006_v39 = vor.u32 %v3644_v31, %v3005_v30  ;;  %v3658_v45 = vld [vmem:[%s4399_s6 + $0x484] sm:$0xf0]  ;;  %v3125_v46 = vld [vmem:[%s4399_s6 + $0x500] sm:$0xf] }
  0x93   : > { %1927 = vmatpush.bf16.msrb.mxu0 %v2742_v10  ;;  %v3696_v10 = vld [vmem:[%s4399_s6 + $0x5b4] sm:$0xf0]  ;;  %v3086_v12 = vor.u32 %v3664_v6, %v3085_v4  ;;  %v3069_v32 = vld [vmem:[%s4399_s6 + $0x490] sm:$0xf]  ;;  %v3690_v50 = vld [vmem:[%s4399_s6 + $0x584] sm:$0xf0]  ;;  %v3062_v58 = vor.u32 %v3658_v45, %v3061_v44 }
  0x94   : > { %1940 = vmatpush.bf16.msrb.mxu1 %v2806_v14  ;;  %v3013_v14 = vld [vmem:[%s4399_s6 + $0x420] sm:$0xf]  ;;  %v3214_v17 = vor.u32 %v3696_v10, %v3213_v9  ;;  %v3070_v42 = vor.u32 %v3660_v34, %v3069_v32  ;;  %v3309_v51 = vld [vmem:[%s4399_s6 + $0x670] sm:$0xf]  ;;  %v3720_v52 = vld [vmem:[%s4399_s6 + $0x674] sm:$0xf0] }
  0x95   : > { %1953 = vmatpush.bf16.msrb.mxu2 %v2870_v15  ;;  %v3646_v15 = vld [vmem:[%s4399_s6 + $0x424] sm:$0xf0]  ;;  %v3736_v55 = vld [vmem:[%s4399_s6 + $0x6f4] sm:$0xf0]  ;;  %v3437_v56 = vld [vmem:[%s4399_s6 + $0x770] sm:$0xf]  ;;  %v3310_v0 = vor.u32 %v3720_v52, %v3309_v51 }
  0x96   : > { %1966 = vmatpush.bf16.msrb.mxu3 %v2934_v18  ;;  %1928 = vmatmul.bf16.vlgmr.msrb.gmra.mxu0 %v4561_v1  ;;  %v3662_v18 = vld [vmem:[%s4399_s6 + $0x4a4] sm:$0xf0]  ;;  %v3014_v26 = vor.u32 %v3646_v15, %v3013_v14  ;;  %v3752_v57 = vld [vmem:[%s4399_s6 + $0x774] sm:$0xf0]  ;;  %v3301_v6 = vld [vmem:[%s4399_s6 + $0x660] sm:$0xf] }
  0x97   : > { %1972 = vmatpush.bf16.msra.mxu0 %v3054_v19  ;;  %1941 = vmatmul.bf16.vlgmr.msrb.gmra.mxu1 %v4565_v3  ;;  %v3141_v19 = vld [vmem:[%s4399_s6 + $0x520] sm:$0xf]  ;;  %v3078_v28 = vor.u32 %v3662_v18, %v3077_v16  ;;  %v3718_v7 = vld [vmem:[%s4399_s6 + $0x664] sm:$0xf0]  ;;  %v567_v18 = vld [vmem:[#allocation1 + $0x1b] sm:$0xff] }
  0x98   : > { %1985 = vmatpush.bf16.msra.mxu1 %v3118_v20  ;;  %1954 = vmatmul.bf16.vlgmr.msrb.gmra.mxu2 %v4557_v61  ;;  %v3678_v20 = vld [vmem:[%s4399_s6 + $0x524] sm:$0xf0]  ;;  %v3365_v8 = vld [vmem:[%s4399_s6 + $0x6e0] sm:$0xf]  ;;  %v3732_v30 = vld [vmem:[%s4399_s6 + $0x6d4] sm:$0xf0] }
  0x99   : > { %1998 = vmatpush.bf16.msra.mxu2 %v3182_v24  ;;  %1967 = vmatmul.bf16.vlgmr.msrb.gmra.mxu3 %v4563_v2  ;;  %v3205_v24 = vld [vmem:[%s4399_s6 + $0x5a0] sm:$0xf]  ;;  %v3734_v10 = vld [vmem:[%s4399_s6 + $0x6e4] sm:$0xf0]  ;;  %v3421_v31 = vld [vmem:[%s4399_s6 + $0x750] sm:$0xf] }
  0x9a   : > { %2011 = vmatpush.bf16.msra.mxu3 %v3246_v29  ;;  %v3142_v29 = vor.u32 %v3678_v20, %v3141_v19  ;;  %v3206_v33 = vor.u32 %v3694_v25, %v3205_v24  ;;  %v3493_v14 = vld [vmem:[%s4399_s6 + $0x7e0] sm:$0xf]  ;;  %v3766_v15 = vld [vmem:[%s4399_s6 + $0x7e4] sm:$0xf0]  ;;  %v3302_v19 = vor.u32 %v3718_v7, %v3301_v6  ;;  %v3366_v20 = vor.u32 %v3734_v10, %v3365_v8  ;;  %v3293_v25 = vld [vmem:[%s4399_s6 + $0x650] sm:$0xf] }
  0x9b   : > { %1973 = vmatpush.bf16.msra.mxu0 %v3046_v35  ;;  %v3133_v35 = vld [vmem:[%s4399_s6 + $0x510] sm:$0xf]  ;;  %v566_v16 = vld [vmem:[#allocation1 + $0x12] sm:$0xff]  ;;  %v3748_v32 = vld [vmem:[%s4399_s6 + $0x754] sm:$0xf0] }
  0x9c   : > { %1986 = vmatpush.bf16.msra.mxu1 %v3110_v36  ;;  %v3676_v36 = vld [vmem:[%s4399_s6 + $0x514] sm:$0xf0]  ;;  %v3746_v44 = vld [vmem:[%s4399_s6 + $0x744] sm:$0xf0]  ;;  %v3477_v45 = vld [vmem:[%s4399_s6 + $0x7c0] sm:$0xf] }
  0x9d   : > { %1999 = vmatpush.bf16.msra.mxu2 %v3174_v37  ;;  %v3197_v37 = vld [vmem:[%s4399_s6 + $0x590] sm:$0xf]  ;;  %v3134_v43 = vor.u32 %v3676_v36, %v3133_v35  ;;  %v3764_v34 = vld [vmem:[%s4399_s6 + $0x7d4] sm:$0xf0]  ;;  %v3726_v6 = vld [vmem:[%s4399_s6 + $0x6a4] sm:$0xf0] }
  0x9e   : > { %2012 = vmatpush.bf16.msra.mxu3 %v3238_v41  ;;  %v3642_v41 = vld [vmem:[%s4399_s6 + $0x404] sm:$0xf0]  ;;  %v3712_v51 = vld [vmem:[%s4399_s6 + $0x634] sm:$0xf0]  ;;  %v3341_v52 = vld [vmem:[%s4399_s6 + $0x6b0] sm:$0xf] }
  0x9f   : > { %1974 = vmatpush.bf16.msra.mxu0 %v3038_v47  ;;  %v3198_v47 = vor.u32 %v3692_v38, %v3197_v37  ;;  %v2998_v54 = vor.u32 %v3642_v41, %v2997_v40  ;;  %v3422_v37 = vor.u32 %v3748_v32, %v3421_v31  ;;  %v3285_v38 = vld [vmem:[%s4399_s6 + $0x640] sm:$0xf]  ;;  %v3742_v8 = vld [vmem:[%s4399_s6 + $0x724] sm:$0xf0] }
  0xa0   : > { %1987 = vmatpush.bf16.msra.mxu1 %v3102_v48  ;;  %v3674_v48 = vld [vmem:[%s4399_s6 + $0x504] sm:$0xf0]  ;;  %v3349_v40 = vld [vmem:[%s4399_s6 + $0x6c0] sm:$0xf] }
  0xa1   : > { %2000 = vmatpush.bf16.msra.mxu2 %v3166_v49  ;;  %v3189_v49 = vld [vmem:[%s4399_s6 + $0x580] sm:$0xf]  ;;  %v3758_v10 = vld [vmem:[%s4399_s6 + $0x7a4] sm:$0xf0] }
  0xa2   : > { %2013 = vmatpush.bf16.msra.mxu3 %v3230_v53  ;;  %v3373_v53 = vld [vmem:[%s4399_s6 + $0x6f0] sm:$0xf]  ;;  %v3190_v63 = vor.u32 %v3690_v50, %v3189_v49  ;;  %v3397_v7 = vld [vmem:[%s4399_s6 + $0x720] sm:$0xf] }
  0xa3   : > { %1975 = vmatpush.bf16.msra.mxu0 %v3030_v59  ;;  %v3126_v59 = vor.u32 %v3674_v48, %v3125_v46  ;;  %v3374_v4 = vor.u32 %v3736_v55, %v3373_v53  ;;  %v3762_v46 = vld [vmem:[%s4399_s6 + $0x7c4] sm:$0xf0]  ;;  %v3277_v50 = vld [vmem:[%s4399_s6 + $0x630] sm:$0xf]  ;;  %v3317_v32 = vld [vmem:[%s4399_s6 + $0x680] sm:$0xf] }
  0xa4   : > { %1988 = vmatpush.bf16.msra.mxu1 %v3094_v60  ;;  %v3501_v60 = vld [vmem:[%s4399_s6 + $0x7f0] sm:$0xf]  ;;  %v3478_v53 = vor.u32 %v3762_v46, %v3477_v45  ;;  %v2671_v45 = vld [vmem:[%s4399_s6 + $0x178] sm:$0xf0] }
  0xa5   : > { %2001 = vmatpush.bf16.msra.mxu2 %v3158_v62  ;;  %v3768_v62 = vld [vmem:[%s4399_s6 + $0x7f4] sm:$0xf0]  ;;  %v3405_v55 = vld [vmem:[%s4399_s6 + $0x730] sm:$0xf] }
  0xa6   : > { %2014 = vmatpush.bf16.msra.mxu3 %v3222_v5  ;;  %v3438_v5 = vor.u32 %v3752_v57, %v3437_v56  ;;  %v3502_v9 = vor.u32 %v3768_v62, %v3501_v60  ;;  %v3744_v56 = vld [vmem:[%s4399_s6 + $0x734] sm:$0xf0]  ;;  %v3469_v57 = vld [vmem:[%s4399_s6 + $0x7b0] sm:$0xf] }
  0xa7   : > { %1976 = vmatpush.bf16.msra.mxu0 %v3022_v11  ;;  %v3429_v11 = vld [vmem:[%s4399_s6 + $0x760] sm:$0xf]  ;;  %v3406_v62 = vor.u32 %v3744_v56, %v3405_v55  ;;  %v2535_v55 = vld [vmem:[%s4399_s6 + $0x68] sm:$0xf0]  ;;  %v3541_v56 = vld [vmem:[%s4399_s6 + $0xe4] sm:$0xf] }
  0xa8   : > { %1989 = vmatpush.bf16.msra.mxu1 %v3086_v12  ;;  %v3750_v12 = vld [vmem:[%s4399_s6 + $0x764] sm:$0xf0] }
  0xa9   : > { %2002 = vmatpush.bf16.msra.mxu2 %v3150_v13  ;;  %v564_v13 = vld [vmem:[#allocation1] sm:$0xff]  ;;  %v3430_v24 = vor.u32 %v3750_v12, %v3429_v11 }
  0xaa   : > { %2015 = vmatpush.bf16.msra.mxu3 %v3214_v17  ;;  %v565_v17 = vld [vmem:[#allocation1 + $0x9] sm:$0xff] }
  0xab   : > { %1977 = vmatpush.bf16.msra.mxu0 %v3014_v26  ;;  %v3716_v26 = vld [vmem:[%s4399_s6 + $0x654] sm:$0xf0] }
  0xac   : > { %1990 = vmatpush.bf16.msra.mxu1 %v3078_v28  ;;  %v3357_v28 = vld [vmem:[%s4399_s6 + $0x6d0] sm:$0xf]  ;;  %v3294_v35 = vor.u32 %v3716_v26, %v3293_v25  ;;  %v3756_v25 = vld [vmem:[%s4399_s6 + $0x794] sm:$0xf0] }
  0xad   : > { %2003 = vmatpush.bf16.msra.mxu2 %v3142_v29  ;;  %v3494_v29 = vor.u32 %v3766_v15, %v3493_v14  ;;  %v3358_v36 = vor.u32 %v3732_v30, %v3357_v28  ;;  %v3261_v14 = vld [vmem:[%s4399_s6 + $0x610] sm:$0xf]  ;;  %v3708_v15 = vld [vmem:[%s4399_s6 + $0x614] sm:$0xf0]  ;;  %v3253_v28 = vld [vmem:[%s4399_s6 + $0x600] sm:$0xf] }
  0xae   : > { %2016 = vmatpush.bf16.msra.mxu3 %v3206_v33  ;;  %v3485_v33 = vld [vmem:[%s4399_s6 + $0x7d0] sm:$0xf]  ;;  %v3262_v26 = vor.u32 %v3708_v15, %v3261_v14  ;;  %v2591_v14 = vld [vmem:[%s4399_s6 + $0xd8] sm:$0xf0]  ;;  %v3555_v15 = vld [vmem:[%s4399_s6 + $0x154] sm:$0xf] }
  0xaf   : > { %1978 = vmatpush.bf16.msra.mxu0 %v3006_v39  ;;  %v3714_v39 = vld [vmem:[%s4399_s6 + $0x644] sm:$0xf0]  ;;  %v3486_v41 = vor.u32 %v3764_v34, %v3485_v33  ;;  %v3381_v34 = vld [vmem:[%s4399_s6 + $0x700] sm:$0xf] }
  0xb0   : > { %1991 = vmatpush.bf16.msra.mxu1 %v3070_v42  ;;  %v3730_v42 = vld [vmem:[%s4399_s6 + $0x6c4] sm:$0xf0] }
  0xb1   : > { %2004 = vmatpush.bf16.msra.mxu2 %v3134_v43  ;;  %v3413_v43 = vld [vmem:[%s4399_s6 + $0x740] sm:$0xf]  ;;  %v3350_v48 = vor.u32 %v3730_v42, %v3349_v40  ;;  %v3722_v33 = vld [vmem:[%s4399_s6 + $0x684] sm:$0xf0]  ;;  %v2543_v40 = vld [vmem:[%s4399_s6 + $0x78] sm:$0xf0] }
  0xb2   : > { %2017 = vmatpush.bf16.msra.mxu3 %v3198_v47  ;;  %v3286_v47 = vor.u32 %v3714_v39, %v3285_v38  ;;  %v3414_v49 = vor.u32 %v3746_v44, %v3413_v43  ;;  %v3754_v38 = vld [vmem:[%s4399_s6 + $0x784] sm:$0xf0]  ;;  %v3527_v39 = vld [vmem:[%s4399_s6 + $0x74] sm:$0xf]  ;;  %v2607_v43 = vld [vmem:[%s4399_s6 + $0xf8] sm:$0xf0]  ;;  %v3318_v46 = vor.u32 %v3722_v33, %v3317_v32 }
  0xb3   : > { %1979 = vmatpush.bf16.msra.mxu0 %v2998_v54  ;;  %v3728_v54 = vld [vmem:[%s4399_s6 + $0x6b4] sm:$0xf0]  ;;  %v3559_v44 = vld [vmem:[%s4399_s6 + $0x174] sm:$0xf]  ;;  %v2647_v32 = vld [vmem:[%s4399_s6 + $0x148] sm:$0xf0] }
  0xb4   : > { %1992 = vmatpush.bf16.msra.mxu1 %v3062_v58  ;;  %v3760_v58 = vld [vmem:[%s4399_s6 + $0x7b4] sm:$0xf0]  ;;  %v3342_v60 = vor.u32 %v3728_v54, %v3341_v52  ;;  %v3525_v54 = vld [vmem:[%s4399_s6 + $0x64] sm:$0xf] }
  0xb5   : > { %2005 = vmatpush.bf16.msra.mxu2 %v3126_v59  ;;  %v3278_v59 = vor.u32 %v3712_v51, %v3277_v50  ;;  %v2546_v51 = vor.u32 %v3527_v39, %v2543_v40  ;;  %v3569_v33 = vld [vmem:[%s4399_s6 + $0x1c4] sm:$0xf]  ;;  %v2511_v39 = vld [vmem:[%s4399_s6 + $0x38] sm:$0xf0]  ;;  %v3535_v40 = vld [vmem:[%s4399_s6 + $0xb4] sm:$0xf] }
  0xb6   : > { %2018 = vmatpush.bf16.msra.mxu3 %v3190_v63  ;;  %1980 = vmatmul.bf16.vlgmr.msra.gmra.mxu0 %v564_v13  ;;  %v3269_v63 = vld [vmem:[%s4399_s6 + $0x620] sm:$0xf]  ;;  %v3398_v13 = vor.u32 %v3742_v8, %v3397_v7  ;;  %v2538_v7 = vor.u32 %v3525_v54, %v2535_v55  ;;  %v2567_v54 = vld [vmem:[%s4399_s6 + $0xa8] sm:$0xf0]  ;;  %v3549_v55 = vld [vmem:[%s4399_s6 + $0x124] sm:$0xf] }
  0xb7   : > { %2024 = vmatpush.bf16.msrb.mxu0 %v3310_v0  ;;  %1993 = vmatmul.bf16.vlgmr.msra.gmra.mxu1 %v565_v17  ;;  %v3710_v0 = vld [vmem:[%s4399_s6 + $0x624] sm:$0xf0] }
  0xb8   : > { %2037 = vmatpush.bf16.msrb.mxu1 %v3374_v4  ;;  %2006 = vmatmul.bf16.vlgmr.msra.gmra.mxu2 %v566_v16  ;;  %v3333_v4 = vld [vmem:[%s4399_s6 + $0x6a0] sm:$0xf]  ;;  %v3270_v11 = vor.u32 %v3710_v0, %v3269_v63  ;;  %v3325_v16 = vld [vmem:[%s4399_s6 + $0x690] sm:$0xf]  ;;  %v3573_v63 = vld [vmem:[%s4399_s6 + $0x1e4] sm:$0xf] }
  0xb9   : > { %2050 = vmatpush.bf16.msrb.mxu2 %v3438_v5  ;;  %2019 = vmatmul.bf16.vlgmr.msra.gmra.mxu3 %v567_v18  ;;  %v3470_v5 = vor.u32 %v3760_v58, %v3469_v57  ;;  %v3334_v12 = vor.u32 %v3726_v6, %v3333_v4  ;;  %v3724_v18 = vld [vmem:[%s4399_s6 + $0x694] sm:$0xf0]  ;;  %v2599_v58 = vld [vmem:[%s4399_s6 + $0xe8] sm:$0xf0] }
  0xba   : > { %2063 = vmatpush.bf16.msrb.mxu3 %v3502_v9  ;;  %v3461_v9 = vld [vmem:[%s4399_s6 + $0x7a0] sm:$0xf]  ;;  %v3326_v30 = vor.u32 %v3724_v18, %v3325_v16  ;;  %v2727_v0 = vld [vmem:[%s4399_s6 + $0x1e8] sm:$0xf0]  ;;  %v571_v6 = vld [vmem:[#allocation1 + $0x3f] sm:$0xff]  ;;  %v2602_v8 = vor.u32 %v3541_v56, %v2599_v58 }
  0xbb   : > { %2025 = vmatpush.bf16.msrb.mxu0 %v3302_v19  ;;  %v3462_v17 = vor.u32 %v3758_v10, %v3461_v9  ;;  %v3389_v19 = vld [vmem:[%s4399_s6 + $0x710] sm:$0xf]  ;;  %v3523_v10 = vld [vmem:[%s4399_s6 + $0x54] sm:$0xf]  ;;  %v2655_v16 = vld [vmem:[%s4399_s6 + $0x158] sm:$0xf0] }
  0xbc   : > { %2038 = vmatpush.bf16.msrb.mxu1 %v3366_v20  ;;  %v3740_v20 = vld [vmem:[%s4399_s6 + $0x714] sm:$0xf0]  ;;  %v570_v4 = vld [vmem:[#allocation1 + $0x36] sm:$0xff]  ;;  %v2719_v18 = vld [vmem:[%s4399_s6 + $0x1d8] sm:$0xf0] }
  0xbd   : > { %2051 = vmatpush.bf16.msrb.mxu2 %v3430_v24  ;;  %v3453_v24 = vld [vmem:[%s4399_s6 + $0x790] sm:$0xf]  ;;  %v3390_v31 = vor.u32 %v3740_v20, %v3389_v19  ;;  %v2631_v56 = vld [vmem:[%s4399_s6 + $0x128] sm:$0xf0] }
  0xbe   : > { %2064 = vmatpush.bf16.msrb.mxu3 %v3494_v29  ;;  %v3706_v29 = vld [vmem:[%s4399_s6 + $0x604] sm:$0xf0]  ;;  %v2695_v58 = vld [vmem:[%s4399_s6 + $0x1a8] sm:$0xf0] }
  0xbf   : > { %2026 = vmatpush.bf16.msrb.mxu0 %v3294_v35  ;;  %v3454_v35 = vor.u32 %v3756_v25, %v3453_v24  ;;  %v3254_v42 = vor.u32 %v3706_v29, %v3253_v28  ;;  %v2658_v24 = vor.u32 %v3555_v15, %v2655_v16  ;;  %v3521_v25 = vld [vmem:[%s4399_s6 + $0x44] sm:$0xf] }
  0xc0   : > { %2039 = vmatpush.bf16.msrb.mxu1 %v3358_v36  ;;  %v3738_v36 = vld [vmem:[%s4399_s6 + $0x704] sm:$0xf0]  ;;  %v3537_v28 = vld [vmem:[%s4399_s6 + $0xc4] sm:$0xf] }
  0xc1   : > { %2052 = vmatpush.bf16.msrb.mxu2 %v3422_v37  ;;  %v3445_v37 = vld [vmem:[%s4399_s6 + $0x780] sm:$0xf]  ;;  %v3529_v16 = vld [vmem:[%s4399_s6 + $0x84] sm:$0xf] }
  0xc2   : > { %2065 = vmatpush.bf16.msrb.mxu3 %v3486_v41  ;;  %v3543_v41 = vld [vmem:[%s4399_s6 + $0xf4] sm:$0xf]  ;;  %v3446_v50 = vor.u32 %v3754_v38, %v3445_v37 }
  0xc3   : > { %2027 = vmatpush.bf16.msrb.mxu0 %v3286_v47  ;;  %v3382_v47 = vor.u32 %v3738_v36, %v3381_v34  ;;  %v2610_v52 = vor.u32 %v3543_v41, %v2607_v43  ;;  %v2711_v34 = vld [vmem:[%s4399_s6 + $0x1c8] sm:$0xf0]  ;;  %v3519_v38 = vld [vmem:[%s4399_s6 + $0x34] sm:$0xf] }
  0xc4   : > { %2040 = vmatpush.bf16.msrb.mxu1 %v3350_v48  ;;  %v3575_v48 = vld [vmem:[%s4399_s6 + $0x1f4] sm:$0xf]  ;;  %v2714_v41 = vor.u32 %v3569_v33, %v2711_v34  ;;  %v2927_v33 = vld [vmem:[%s4399_s6 + $0x378] sm:$0xf0] }
  0xc5   : > { %2053 = vmatpush.bf16.msrb.mxu2 %v3414_v49  ;;  %v2735_v49 = vld [vmem:[%s4399_s6 + $0x1f8] sm:$0xf0]  ;;  %v3551_v43 = vld [vmem:[%s4399_s6 + $0x134] sm:$0xf] }
  0xc6   : > { %2066 = vmatpush.bf16.msrb.mxu3 %v3478_v53  ;;  %v2674_v53 = vor.u32 %v3559_v44, %v2671_v45  ;;  %v2738_v57 = vor.u32 %v3575_v48, %v2735_v49  ;;  %v2639_v44 = vld [vmem:[%s4399_s6 + $0x138] sm:$0xf0]  ;;  %v3567_v45 = vld [vmem:[%s4399_s6 + $0x1b4] sm:$0xf] }
  0xc7   : > { %2028 = vmatpush.bf16.msrb.mxu0 %v3278_v59  ;;  %v3557_v59 = vld [vmem:[%s4399_s6 + $0x164] sm:$0xf]  ;;  %v2642_v49 = vor.u32 %v3551_v43, %v2639_v44  ;;  %v2791_v43 = vld [vmem:[%s4399_s6 + $0x268] sm:$0xf0] }
  0xc8   : > { %2041 = vmatpush.bf16.msrb.mxu1 %v3342_v60  ;;  %v2663_v60 = vld [vmem:[%s4399_s6 + $0x168] sm:$0xf0]  ;;  %v3605_v44 = vld [vmem:[%s4399_s6 + $0x2e4] sm:$0xf] }
  0xc9   : > { %2054 = vmatpush.bf16.msrb.mxu2 %v3406_v62  ;;  %v568_v62 = vld [vmem:[#allocation1 + $0x24] sm:$0xff]  ;;  %v2666_v9 = vor.u32 %v3557_v59, %v2663_v60 }
  0xca   : > { %2067 = vmatpush.bf16.msrb.mxu3 %v3470_v5  ;;  %v569_v5 = vld [vmem:[#allocation1 + $0x2d] sm:$0xff] }
  0xcb   : > { %2029 = vmatpush.bf16.msrb.mxu0 %v3270_v11  ;;  %v2527_v11 = vld [vmem:[%s4399_s6 + $0x58] sm:$0xf0] }
  0xcc   : > { %2042 = vmatpush.bf16.msrb.mxu1 %v3334_v12  ;;  %v3539_v12 = vld [vmem:[%s4399_s6 + $0xd4] sm:$0xf]  ;;  %v2530_v19 = vor.u32 %v3523_v10, %v2527_v11  ;;  %v2687_v10 = vld [vmem:[%s4399_s6 + $0x198] sm:$0xf0] }
  0xcd   : > { %2055 = vmatpush.bf16.msrb.mxu2 %v3398_v13  ;;  %v2730_v13 = vor.u32 %v3573_v63, %v2727_v0  ;;  %v2594_v20 = vor.u32 %v3539_v12, %v2591_v14  ;;  %v3515_v63 = vld [vmem:[%s4399_s6 + $0x14] sm:$0xf]  ;;  %v2495_v0 = vld [vmem:[%s4399_s6 + $0x18] sm:$0xf0]  ;;  %v3513_v12 = vld [vmem:[%s4399_s6 + $0x4] sm:$0xf] }
  0xce   : > { %2068 = vmatpush.bf16.msrb.mxu3 %v3462_v17  ;;  %v3571_v17 = vld [vmem:[%s4399_s6 + $0x1d4] sm:$0xf]  ;;  %v2498_v11 = vor.u32 %v3515_v63, %v2495_v0  ;;  %v2975_v63 = vld [vmem:[%s4399_s6 + $0x3d8] sm:$0xf0] }
  0xcf   : > { %2030 = vmatpush.bf16.msrb.mxu0 %v3262_v26  ;;  %v2519_v26 = vld [vmem:[%s4399_s6 + $0x48] sm:$0xf0]  ;;  %v2722_v29 = vor.u32 %v3571_v17, %v2719_v18  ;;  %v3545_v18 = vld [vmem:[%s4399_s6 + $0x104] sm:$0xf] }
  0xd0   : > { %2043 = vmatpush.bf16.msrb.mxu1 %v3326_v30  ;;  %v2583_v30 = vld [vmem:[%s4399_s6 + $0xc8] sm:$0xf0] }
  0xd1   : > { %2056 = vmatpush.bf16.msrb.mxu2 %v3390_v31  ;;  %v3553_v31 = vld [vmem:[%s4399_s6 + $0x144] sm:$0xf]  ;;  %v2586_v36 = vor.u32 %v3537_v28, %v2583_v30  ;;  %v2551_v17 = vld [vmem:[%s4399_s6 + $0x88] sm:$0xf0]  ;;  %v2799_v28 = vld [vmem:[%s4399_s6 + $0x278] sm:$0xf0] }
  0xd2   : > { %2069 = vmatpush.bf16.msrb.mxu3 %v3454_v35  ;;  %v2522_v35 = vor.u32 %v3521_v25, %v2519_v26  ;;  %v2650_v37 = vor.u32 %v3553_v31, %v2647_v32  ;;  %v2679_v25 = vld [vmem:[%s4399_s6 + $0x188] sm:$0xf0]  ;;  %v3591_v26 = vld [vmem:[%s4399_s6 + $0x274] sm:$0xf]  ;;  %v2863_v31 = vld [vmem:[%s4399_s6 + $0x2f8] sm:$0xf0]  ;;  %v2554_v34 = vor.u32 %v3529_v16, %v2551_v17 }
  0xd3   : > { %2031 = vmatpush.bf16.msrb.mxu0 %v3254_v42  ;;  %v2575_v42 = vld [vmem:[%s4399_s6 + $0xb8] sm:$0xf0]  ;;  %v3623_v32 = vld [vmem:[%s4399_s6 + $0x374] sm:$0xf] }
  0xd4   : > { %2044 = vmatpush.bf16.msrb.mxu1 %v3318_v46  ;;  %v2703_v46 = vld [vmem:[%s4399_s6 + $0x1b8] sm:$0xf0]  ;;  %v2578_v48 = vor.u32 %v3535_v40, %v2575_v42  ;;  %v3589_v42 = vld [vmem:[%s4399_s6 + $0x264] sm:$0xf]  ;;  %v3599_v16 = vld [vmem:[%s4399_s6 + $0x2b4] sm:$0xf] }
  0xd5   : > { %2057 = vmatpush.bf16.msrb.mxu2 %v3382_v47  ;;  %v2514_v47 = vor.u32 %v3519_v38, %v2511_v39  ;;  %v2802_v39 = vor.u32 %v3591_v26, %v2799_v28 }
  0xd6   : > { %2070 = vmatpush.bf16.msrb.mxu3 %v3446_v50  ;;  %2032 = vmatmul.bf16.vlgmr.msrb.gmra.mxu0 %v568_v62  ;;  %v3517_v50 = vld [vmem:[%s4399_s6 + $0x24] sm:$0xf]  ;;  %v2634_v62 = vor.u32 %v3549_v55, %v2631_v56  ;;  %v2783_v55 = vld [vmem:[%s4399_s6 + $0x258] sm:$0xf0]  ;;  %v3603_v56 = vld [vmem:[%s4399_s6 + $0x2d4] sm:$0xf] }
  0xd7   : > { %2076 = vmatpush.bf16.msra.mxu0 %v2546_v51  ;;  %2045 = vmatmul.bf16.vlgmr.msrb.gmra.mxu1 %v569_v5  ;;  %v2503_v51 = vld [vmem:[%s4399_s6 + $0x28] sm:$0xf0] }
  0xd8   : > { %2089 = vmatpush.bf16.msra.mxu1 %v2610_v52  ;;  %2058 = vmatmul.bf16.vlgmr.msrb.gmra.mxu2 %v570_v4  ;;  %v3533_v52 = vld [vmem:[%s4399_s6 + $0xa4] sm:$0xf]  ;;  %v2506_v59 = vor.u32 %v3517_v50, %v2503_v51  ;;  %v3531_v4 = vld [vmem:[%s4399_s6 + $0x94] sm:$0xf]  ;;  %v2983_v50 = vld [vmem:[%s4399_s6 + $0x3e8] sm:$0xf0]  ;;  %v2794_v51 = vor.u32 %v3589_v42, %v2791_v43 }
  0xd9   : > { %2102 = vmatpush.bf16.msra.mxu2 %v2674_v53  ;;  %2071 = vmatmul.bf16.vlgmr.msrb.gmra.mxu3 %v571_v6  ;;  %v2706_v53 = vor.u32 %v3567_v45, %v2703_v46  ;;  %v2570_v60 = vor.u32 %v3533_v52, %v2567_v54  ;;  %v2559_v6 = vld [vmem:[%s4399_s6 + $0x98] sm:$0xf0]  ;;  %v2855_v46 = vld [vmem:[%s4399_s6 + $0x2e8] sm:$0xf0]  ;;  %v3587_v54 = vld [vmem:[%s4399_s6 + $0x254] sm:$0xf] }
  0xda   : > { %2115 = vmatpush.bf16.msra.mxu3 %v2738_v57  ;;  %v3565_v57 = vld [vmem:[%s4399_s6 + $0x1a4] sm:$0xf]  ;;  %v2562_v14 = vor.u32 %v3531_v4, %v2559_v6  ;;  %v2858_v52 = vor.u32 %v3605_v44, %v2855_v46  ;;  %v2786_v0 = vor.u32 %v3587_v54, %v2783_v55  ;;  %v2775_v6 = vld [vmem:[%s4399_s6 + $0x248] sm:$0xf0]  ;;  %v3579_v43 = vld [vmem:[%s4399_s6 + $0x214] sm:$0xf] }
  0xdb   : > { %2077 = vmatpush.bf16.msra.mxu0 %v2538_v7  ;;  %v2698_v5 = vor.u32 %v3565_v57, %v2695_v58  ;;  %v3547_v7 = vld [vmem:[%s4399_s6 + $0x114] sm:$0xf]  ;;  %v2847_v58 = vld [vmem:[%s4399_s6 + $0x2d8] sm:$0xf0]  ;;  %v3577_v55 = vld [vmem:[%s4399_s6 + $0x204] sm:$0xf] }
  0xdc   : > { %2090 = vmatpush.bf16.msra.mxu1 %v2602_v8  ;;  %v2623_v8 = vld [vmem:[%s4399_s6 + $0x118] sm:$0xf0]  ;;  %v2850_v4 = vor.u32 %v3603_v56, %v2847_v58  ;;  %v2743_v56 = vld [vmem:[%s4399_s6 + $0x208] sm:$0xf0] }
  0xdd   : > { %2103 = vmatpush.bf16.msra.mxu2 %v2666_v9  ;;  %v3563_v9 = vld [vmem:[%s4399_s6 + $0x194] sm:$0xf]  ;;  %v2626_v15 = vor.u32 %v3547_v7, %v2623_v8  ;;  %v3601_v7 = vld [vmem:[%s4399_s6 + $0x2c4] sm:$0xf]  ;;  %v2839_v8 = vld [vmem:[%s4399_s6 + $0x2c8] sm:$0xf0] }
  0xde   : > { %2116 = vmatpush.bf16.msra.mxu3 %v2730_v13  ;;  %v2487_v13 = vld [vmem:[%s4399_s6 + $0x8] sm:$0xf0]  ;;  %v2751_v44 = vld [vmem:[%s4399_s6 + $0x218] sm:$0xf0] }
  0xdf   : > { %2078 = vmatpush.bf16.msra.mxu0 %v2530_v19  ;;  %v2690_v19 = vor.u32 %v3563_v9, %v2687_v10  ;;  %v2490_v30 = vor.u32 %v3513_v12, %v2487_v13  ;;  %v2903_v9 = vld [vmem:[%s4399_s6 + $0x348] sm:$0xf0]  ;;  %v3633_v10 = vld [vmem:[%s4399_s6 + $0x3c4] sm:$0xf]  ;;  %v2842_v12 = vor.u32 %v3601_v7, %v2839_v8  ;;  %v2754_v54 = vor.u32 %v3579_v43, %v2751_v44  ;;  %v3055_v8 = vld [vmem:[%s4399_s6 + $0x478] sm:$0xf0] }
  0xe0   : > { %2091 = vmatpush.bf16.msra.mxu1 %v2594_v20  ;;  %v2615_v20 = vld [vmem:[%s4399_s6 + $0x108] sm:$0xf0]  ;;  %v3667_v43 = vld [vmem:[%s4399_s6 + $0x4d4] sm:$0xf] }
  0xe1   : > { %2104 = vmatpush.bf16.msra.mxu2 %v2658_v24  ;;  %v3561_v24 = vld [vmem:[%s4399_s6 + $0x184] sm:$0xf] }
  0xe2   : > { %2117 = vmatpush.bf16.msra.mxu3 %v2722_v29  ;;  %v3607_v29 = vld [vmem:[%s4399_s6 + $0x2f4] sm:$0xf]  ;;  %v2682_v38 = vor.u32 %v3561_v24, %v2679_v25  ;;  %v2959_v25 = vld [vmem:[%s4399_s6 + $0x3b8] sm:$0xf0] }
  0xe3   : > { %2079 = vmatpush.bf16.msra.mxu0 %v2522_v35  ;;  %v2618_v35 = vor.u32 %v3545_v18, %v2615_v20  ;;  %v2866_v40 = vor.u32 %v3607_v29, %v2863_v31  ;;  %v2831_v18 = vld [vmem:[%s4399_s6 + $0x2b8] sm:$0xf0]  ;;  %v3631_v24 = vld [vmem:[%s4399_s6 + $0x3b4] sm:$0xf]  ;;  %v2759_v31 = vld [vmem:[%s4399_s6 + $0x228] sm:$0xf0] }
  0xe4   : > { %2092 = vmatpush.bf16.msra.mxu1 %v2586_v36  ;;  %v3639_v36 = vld [vmem:[%s4399_s6 + $0x3f4] sm:$0xf]  ;;  %v2895_v20 = vld [vmem:[%s4399_s6 + $0x338] sm:$0xf0]  ;;  %v2834_v28 = vor.u32 %v3599_v16, %v2831_v18 }
  0xe5   : > { %2105 = vmatpush.bf16.msra.mxu2 %v2650_v37  ;;  %v2991_v37 = vld [vmem:[%s4399_s6 + $0x3f8] sm:$0xf0]  ;;  %v3703_v16 = vld [vmem:[%s4399_s6 + $0x5f4] sm:$0xf] }
  0xe6   : > { %2118 = vmatpush.bf16.msra.mxu3 %v2714_v41  ;;  %v2930_v41 = vor.u32 %v3623_v32, %v2927_v33  ;;  %v2994_v45 = vor.u32 %v3639_v36, %v2991_v37  ;;  %v3597_v32 = vld [vmem:[%s4399_s6 + $0x2a4] sm:$0xf]  ;;  %v2962_v33 = vor.u32 %v3631_v24, %v2959_v25  ;;  %v2887_v36 = vld [vmem:[%s4399_s6 + $0x328] sm:$0xf0] }
  0xe7   : > { %2080 = vmatpush.bf16.msra.mxu0 %v2514_v47  ;;  %v3621_v47 = vld [vmem:[%s4399_s6 + $0x364] sm:$0xf] }
  0xe8   : > { %2093 = vmatpush.bf16.msra.mxu1 %v2578_v48  ;;  %v2919_v48 = vld [vmem:[%s4399_s6 + $0x368] sm:$0xf0]  ;;  %v3629_v37 = vld [vmem:[%s4399_s6 + $0x3a4] sm:$0xf] }
  0xe9   : > { %2106 = vmatpush.bf16.msra.mxu2 %v2642_v49  ;;  %v3637_v49 = vld [vmem:[%s4399_s6 + $0x3e4] sm:$0xf] }
  0xea   : > { %2119 = vmatpush.bf16.msra.mxu3 %v2706_v53  ;;  %v2922_v53 = vor.u32 %v3621_v47, %v2919_v48  ;;  %v2986_v57 = vor.u32 %v3637_v49, %v2983_v50  ;;  %v2815_v48 = vld [vmem:[%s4399_s6 + $0x298] sm:$0xf0]  ;;  %v3611_v49 = vld [vmem:[%s4399_s6 + $0x314] sm:$0xf] }
  0xeb   : > { %2081 = vmatpush.bf16.msra.mxu0 %v2506_v59  ;;  %v3619_v59 = vld [vmem:[%s4399_s6 + $0x354] sm:$0xf]  ;;  %v2879_v50 = vld [vmem:[%s4399_s6 + $0x318] sm:$0xf0] }
  0xec   : > { %2094 = vmatpush.bf16.msra.mxu1 %v2570_v60  ;;  %v2911_v60 = vld [vmem:[%s4399_s6 + $0x358] sm:$0xf0]  ;;  %v2882_v58 = vor.u32 %v3611_v49, %v2879_v50 }
  0xed   : > { %2107 = vmatpush.bf16.msra.mxu2 %v2634_v62  ;;  %v3635_v62 = vld [vmem:[%s4399_s6 + $0x3d4] sm:$0xf]  ;;  %v3231_v49 = vld [vmem:[%s4399_s6 + $0x5d8] sm:$0xf0] }
  0xee   : > { %2120 = vmatpush.bf16.msra.mxu3 %v2698_v5  ;;  %v2914_v5 = vor.u32 %v3619_v59, %v2911_v60  ;;  %v3593_v59 = vld [vmem:[%s4399_s6 + $0x284] sm:$0xf]  ;;  %v2807_v60 = vld [vmem:[%s4399_s6 + $0x288] sm:$0xf0] }
  0xef   : > { %2082 = vmatpush.bf16.msra.mxu0 %v2498_v11 }
  0xf0   : > { %2095 = vmatpush.bf16.msra.mxu1 %v2562_v14  ;;  %v3583_v14 = vld [vmem:[%s4399_s6 + $0x234] sm:$0xf] }
  0xf1   : > { %2108 = vmatpush.bf16.msra.mxu2 %v2626_v15  ;;  %v2767_v15 = vld [vmem:[%s4399_s6 + $0x238] sm:$0xf0] }
  0xf2   : > { %2121 = vmatpush.bf16.msra.mxu3 %v2690_v19  ;;  %v3615_v19 = vld [vmem:[%s4399_s6 + $0x334] sm:$0xf]  ;;  %v2770_v26 = vor.u32 %v3583_v14, %v2767_v15  ;;  %v2810_v14 = vor.u32 %v3593_v59, %v2807_v60 }
  0xf3   : > { %2083 = vmatpush.bf16.msra.mxu0 %v2490_v30  ;;  %v2898_v29 = vor.u32 %v3615_v19, %v2895_v20  ;;  %v3581_v30 = vld [vmem:[%s4399_s6 + $0x224] sm:$0xf] }
  0xf4   : > { %2096 = vmatpush.bf16.msra.mxu1 %v2554_v34  ;;  %v2823_v34 = vld [vmem:[%s4399_s6 + $0x2a8] sm:$0xf0] }
  0xf5   : > { %2109 = vmatpush.bf16.msra.mxu2 %v2618_v35  ;;  %v3613_v35 = vld [vmem:[%s4399_s6 + $0x324] sm:$0xf] }
  0xf6   : > { %2122 = vmatpush.bf16.msra.mxu3 %v2682_v38  ;;  %2084 = vmatmul.bf16.vlgmr.msra.gmra.mxu0 %v4521_v22  ;;  %v2978_v22 = vor.u32 %v3635_v62, %v2975_v63  ;;  %v2951_v38 = vld [vmem:[%s4399_s6 + $0x3a8] sm:$0xf0]  ;;  %v2890_v42 = vor.u32 %v3613_v35, %v2887_v36  ;;  %v3609_v62 = vld [vmem:[%s4399_s6 + $0x304] sm:$0xf] }
  0xf7   : > { %2128 = vmatpush.bf16.msrb.mxu0 %v2802_v39  ;;  %2097 = vmatmul.bf16.vlgmr.msra.gmra.mxu1 %v4528_v27  ;;  %v2967_v27 = vld [vmem:[%s4399_s6 + $0x3c8] sm:$0xf0]  ;;  %v2762_v39 = vor.u32 %v3581_v30, %v2759_v31  ;;  %v2954_v47 = vor.u32 %v3629_v37, %v2951_v38 }
  0xf8   : > { %2141 = vmatpush.bf16.msrb.mxu1 %v2866_v40  ;;  %2110 = vmatmul.bf16.vlgmr.msra.gmra.mxu2 %v4519_v21  ;;  %v3585_v21 = vld [vmem:[%s4399_s6 + $0x244] sm:$0xf]  ;;  %v2970_v17 = vor.u32 %v3633_v10, %v2967_v27  ;;  %v1877_v40 = vpop.f32.mrf.mxu0  ;;  %v3119_v10 = vld [vmem:[%s4399_s6 + $0x4f8] sm:$0xf0]  ;;  %v3687_v27 = vld [vmem:[%s4399_s6 + $0x574] sm:$0xf] }
  0xf9   : > { %2154 = vmatpush.bf16.msrb.mxu2 %v2930_v41  ;;  %2123 = vmatmul.bf16.vlgmr.msra.gmra.mxu3 %v4523_v23  ;;  %v3617_v23 = vld [vmem:[%s4399_s6 + $0x344] sm:$0xf]  ;;  %v2778_v11 = vor.u32 %v3585_v21, %v2775_v6  ;;  %v2826_v41 = vor.u32 %v3597_v32, %v2823_v34  ;;  %v2935_v21 = vld [vmem:[%s4399_s6 + $0x388] sm:$0xf0] }
  0xfa   : > { %2167 = vmatpush.bf16.msrb.mxu3 %v2994_v45  ;;  %v2906_v13 = vor.u32 %v3617_v23, %v2903_v9  ;;  %v3595_v45 = vld [vmem:[%s4399_s6 + $0x294] sm:$0xf]  ;;  %v1890_v46 = vpop.f32.mrf.mxu1  ;;  %v2746_v9 = vor.u32 %v3577_v55, %v2743_v56  ;;  %v3111_v31 = vld [vmem:[%s4399_s6 + $0x4e8] sm:$0xf0]  ;;  %v3685_v32 = vld [vmem:[%s4399_s6 + $0x564] sm:$0xf] }
  0xfb   : > { %2129 = vmatpush.bf16.msrb.mxu0 %v2794_v51  ;;  %v1891_v51 = vadd.f32 %v1890_v46, %v1877_v40  ;;  %v3671_v23 = vld [vmem:[%s4399_s6 + $0x4f4] sm:$0xf]  ;;  %v3701_v34 = vld [vmem:[%s4399_s6 + $0x5e4] sm:$0xf]  ;;  %v3239_v35 = vld [vmem:[%s4399_s6 + $0x5e8] sm:$0xf0] }
  0xfc   : > { %2142 = vmatpush.bf16.msrb.mxu1 %v2858_v52  ;;  %v3627_v52 = vld [vmem:[%s4399_s6 + $0x394] sm:$0xf]  ;;  %v3122_v24 = vor.u32 %v3671_v23, %v3119_v10  ;;  %v3242_v44 = vor.u32 %v3701_v34, %v3239_v35  ;;  %v3681_v55 = vld [vmem:[%s4399_s6 + $0x544] sm:$0xf]  ;;  %v3159_v56 = vld [vmem:[%s4399_s6 + $0x548] sm:$0xf0] }
  0xfd   : > { %2155 = vmatpush.bf16.msrb.mxu2 %v2922_v53  ;;  %v2943_v53 = vld [vmem:[%s4399_s6 + $0x398] sm:$0xf0]  ;;  %v1903_v63 = vpop.f32.mrf.mxu2  ;;  %v3683_v46 = vld [vmem:[%s4399_s6 + $0x554] sm:$0xf] }
  0xfe   : > { %2168 = vmatpush.bf16.msrb.mxu3 %v2986_v57  ;;  %v2818_v57 = vor.u32 %v3595_v45, %v2815_v48  ;;  %v1904_v6 = vadd.f32 %v1903_v63, %v1891_v51  ;;  %v1916_v7 = vpop.f32.mrf.mxu3  ;;  %v3103_v45 = vld [vmem:[%s4399_s6 + $0x4d8] sm:$0xf0]  ;;  %v3699_v48 = vld [vmem:[%s4399_s6 + $0x5d4] sm:$0xf] }
  0xff   : > { %2130 = vmatpush.bf16.msrb.mxu0 %v2786_v0  ;;  %v2946_v0 = vor.u32 %v3627_v52, %v2943_v53  ;;  %v3649_v52 = vld [vmem:[%s4399_s6 + $0x444] sm:$0xf]  ;;  %v3031_v53 = vld [vmem:[%s4399_s6 + $0x448] sm:$0xf0]  ;;  %v3647_v63 = vld [vmem:[%s4399_s6 + $0x434] sm:$0xf] }
 0x100   : > { %2143 = vmatpush.bf16.msrb.mxu1 %v2850_v4  ;;  %v2871_v4 = vld [vmem:[%s4399_s6 + $0x308] sm:$0xf0]  ;;  %v3695_v23 = vld [vmem:[%s4399_s6 + $0x5b4] sm:$0xf]  ;;  %v3007_v35 = vld [vmem:[%s4399_s6 + $0x418] sm:$0xf0] }
 0x101   : > { %2156 = vmatpush.bf16.msrb.mxu2 %v2914_v5  ;;  %v3625_v5 = vld [vmem:[%s4399_s6 + $0x384] sm:$0xf]  ;;  %v2874_v15 = vor.u32 %v3609_v62, %v2871_v4  ;;  %v3162_v62 = vor.u32 %v3681_v55, %v3159_v56  ;;  %v3663_v4 = vld [vmem:[%s4399_s6 + $0x4b4] sm:$0xf]  ;;  %v3311_v56 = vld [vmem:[%s4399_s6 + $0x678] sm:$0xf0] }
 0x102   : > { %2169 = vmatpush.bf16.msrb.mxu3 %v2978_v22  ;;  %v3655_v22 = vld [vmem:[%s4399_s6 + $0x474] sm:$0xf]  ;;  %v1892_v18 = vpop.f32.mrf.mxu1  ;;  %v2938_v19 = vor.u32 %v3625_v5, %v2935_v21 }
 0x103   : > { %2131 = vmatpush.bf16.msrb.mxu0 %v2778_v11  ;;  %v3183_v11 = vld [vmem:[%s4399_s6 + $0x578] sm:$0xf0]  ;;  %v3058_v20 = vor.u32 %v3655_v22, %v3055_v8  ;;  %v3679_v22 = vld [vmem:[%s4399_s6 + $0x534] sm:$0xf]  ;;  %v3079_v18 = vld [vmem:[%s4399_s6 + $0x4a8] sm:$0xf0] }
 0x104   : > { %2144 = vmatpush.bf16.msrb.mxu1 %v2842_v12  ;;  %v4839_v12 = vadd.f32 %v1916_v7, %v1904_v6  ;;  %v3186_v25 = vor.u32 %v3687_v27, %v3183_v11  ;;  %v3087_v7 = vld [vmem:[%s4399_s6 + $0x4b8] sm:$0xf0]  ;;  %v3643_v34 = vld [vmem:[%s4399_s6 + $0x414] sm:$0xf] }
 0x105   : > { %2157 = vmatpush.bf16.msrb.mxu2 %v2906_v13  ;;  %v1879_v13 = vpop.f32.mrf.mxu0  ;;  %v1905_v36 = vpop.f32.mrf.mxu2  ;;  %v3151_v8 = vld [vmem:[%s4399_s6 + $0x538] sm:$0xf0]  ;;  %v3090_v11 = vor.u32 %v3663_v4, %v3087_v7  ;;  %v3719_v55 = vld [vmem:[%s4399_s6 + $0x674] sm:$0xf] }
 0x106   : > { %2170 = vmatpush.bf16.msrb.mxu3 %v2970_v17  ;;  %v3247_v17 = vld [vmem:[%s4399_s6 + $0x5f8] sm:$0xf0]  ;;  %v1918_v38 = vpop.f32.mrf.mxu3  ;;  %v3645_v13 = vld [vmem:[%s4399_s6 + $0x424] sm:$0xf]  ;;  %v3659_v36 = vld [vmem:[%s4399_s6 + $0x494] sm:$0xf] }
 0x107   : > { %2132 = vmatpush.bf16.msrb.mxu0 %v2770_v26  ;;  %v3653_v26 = vld [vmem:[%s4399_s6 + $0x464] sm:$0xf]  ;;  %v3250_v30 = vor.u32 %v3703_v16, %v3247_v17  ;;  %v3503_v4 = vld [vmem:[%s4399_s6 + $0x7f8] sm:$0xf0] }
 0x108   : > { %2145 = vmatpush.bf16.msrb.mxu1 %v2834_v28  ;;  %v3047_v28 = vld [vmem:[%s4399_s6 + $0x468] sm:$0xf0] }
 0x109   : > { %2158 = vmatpush.bf16.msrb.mxu2 %v2898_v29  ;;  %v3669_v29 = vld [vmem:[%s4399_s6 + $0x4e4] sm:$0xf]  ;;  %v3050_v37 = vor.u32 %v3653_v26, %v3047_v28  ;;  %v3207_v28 = vld [vmem:[%s4399_s6 + $0x5a8] sm:$0xf0] }
 0x10a   : > { %2171 = vmatpush.bf16.msrb.mxu3 %v2962_v33  ;;  %v3175_v33 = vld [vmem:[%s4399_s6 + $0x568] sm:$0xf0]  ;;  %v3693_v26 = vld [vmem:[%s4399_s6 + $0x5a4] sm:$0xf] }
 0x10b   : > { %2133 = vmatpush.bf16.msrb.mxu0 %v2762_v39  ;;  %v3114_v39 = vor.u32 %v3669_v29, %v3111_v31  ;;  %v3178_v40 = vor.u32 %v3685_v32, %v3175_v33  ;;  %v3210_v38 = vor.u32 %v3693_v26, %v3207_v28  ;;  %v3747_v26 = vld [vmem:[%s4399_s6 + $0x754] sm:$0xf]  ;;  %v3423_v28 = vld [vmem:[%s4399_s6 + $0x758] sm:$0xf0] }
 0x10c   : > { %2146 = vmatpush.bf16.msrb.mxu1 %v2826_v41  ;;  %v3651_v41 = vld [vmem:[%s4399_s6 + $0x454] sm:$0xf] }
 0x10d   : > { %2159 = vmatpush.bf16.msrb.mxu2 %v2890_v42  ;;  %v3039_v42 = vld [vmem:[%s4399_s6 + $0x458] sm:$0xf0] }
 0x10e   : > { %2172 = vmatpush.bf16.msrb.mxu3 %v2954_v47  ;;  %v3167_v47 = vld [vmem:[%s4399_s6 + $0x558] sm:$0xf0]  ;;  %v3042_v50 = vor.u32 %v3651_v41, %v3039_v42  ;;  %v3691_v42 = vld [vmem:[%s4399_s6 + $0x594] sm:$0xf] }
 0x10f   : > { %2134 = vmatpush.bf16.msrb.mxu0 %v2754_v54  ;;  %v3170_v51 = vor.u32 %v3683_v46, %v3167_v47  ;;  %v3095_v54 = vld [vmem:[%s4399_s6 + $0x4c8] sm:$0xf0]  ;;  %v3135_v41 = vld [vmem:[%s4399_s6 + $0x518] sm:$0xf0] }
 0x110   : > { %2147 = vmatpush.bf16.msrb.mxu1 %v2818_v57  ;;  %v3697_v57 = vld [vmem:[%s4399_s6 + $0x5c4] sm:$0xf]  ;;  %v2999_v46 = vld [vmem:[%s4399_s6 + $0x408] sm:$0xf0] }
 0x111   : > { %2160 = vmatpush.bf16.msrb.mxu2 %v2882_v58  ;;  %v3223_v58 = vld [vmem:[%s4399_s6 + $0x5c8] sm:$0xf0] }
 0x112   : > { %2173 = vmatpush.bf16.msrb.mxu3 %v2946_v0  ;;  %v3023_v0 = vld [vmem:[%s4399_s6 + $0x438] sm:$0xf0]  ;;  %v3226_v6 = vor.u32 %v3697_v57, %v3223_v58  ;;  %v3735_v57 = vld [vmem:[%s4399_s6 + $0x6f4] sm:$0xf] }
 0x113   : > { %2135 = vmatpush.bf16.msrb.mxu0 %v2746_v9  ;;  %v1929_v59 = vpop.f32.mrf.mxu0  ;;  %v3215_v9 = vld [vmem:[%s4399_s6 + $0x5b8] sm:$0xf0]  ;;  %v3026_v27 = vor.u32 %v3647_v63, %v3023_v0  ;;  %v3767_v0 = vld [vmem:[%s4399_s6 + $0x7f4] sm:$0xf] }
 0x114   : > { %2148 = vmatpush.bf16.msrb.mxu1 %v2810_v14  ;;  %v1930_v5 = vadd.f32 %v1929_v59, %v4839_v12  ;;  %v1942_v21 = vpop.f32.mrf.mxu1  ;;  %v3154_v12 = vor.u32 %v3679_v22, %v3151_v8  ;;  %v3015_v14 = vld [vmem:[%s4399_s6 + $0x428] sm:$0xf0]  ;;  %v3218_v17 = vor.u32 %v3695_v23, %v3215_v9  ;;  %v3751_v59 = vld [vmem:[%s4399_s6 + $0x774] sm:$0xf]  ;;  %v3717_v22 = vld [vmem:[%s4399_s6 + $0x664] sm:$0xf]  ;;  %v3506_v9 = vor.u32 %v3767_v0, %v3503_v4 }
 0x115   : > { %2161 = vmatpush.bf16.msrb.mxu2 %v2874_v15  ;;  %v3661_v15 = vld [vmem:[%s4399_s6 + $0x4a4] sm:$0xf]  ;;  %v3018_v29 = vor.u32 %v3645_v13, %v3015_v14  ;;  %v3303_v8 = vld [vmem:[%s4399_s6 + $0x668] sm:$0xf0] }
 0x116   : > { %2174 = vmatpush.bf16.msrb.mxu3 %v2938_v19  ;;  %2136 = vmatmul.bf16.vlgmr.msrb.gmra.mxu0 %v4561_v1  ;;  %v3665_v1 = vld [vmem:[%s4399_s6 + $0x4c4] sm:$0xf]  ;;  %v1943_v10 = vadd.f32 %v1942_v21, %v1930_v5  ;;  %v3082_v32 = vor.u32 %v3661_v15, %v3079_v18  ;;  %v3314_v21 = vor.u32 %v3719_v55, %v3311_v56  ;;  %v3495_v13 = vld [vmem:[%s4399_s6 + $0x7e8] sm:$0xf0]  ;;  %v3295_v18 = vld [vmem:[%s4399_s6 + $0x658] sm:$0xf0] }
 0x117   : > { %2180 = vmatpush.bf16.msra.mxu0 %v3058_v20  ;;  %2149 = vmatmul.bf16.vlgmr.msrb.gmra.mxu1 %v4565_v3  ;;  %v3034_v3 = vor.u32 %v3649_v52, %v3031_v53  ;;  %v3098_v60 = vor.u32 %v3665_v1, %v3095_v54  ;;  %v3677_v19 = vld [vmem:[%s4399_s6 + $0x524] sm:$0xf]  ;;  %v3143_v20 = vld [vmem:[%s4399_s6 + $0x528] sm:$0xf0]  ;;  %v3306_v14 = vor.u32 %v3717_v22, %v3303_v8  ;;  %v3343_v55 = vld [vmem:[%s4399_s6 + $0x6b8] sm:$0xf0] }
 0x118   : > { %2193 = vmatpush.bf16.msra.mxu1 %v3122_v24  ;;  %2162 = vmatmul.bf16.vlgmr.msrb.gmra.mxu2 %v4557_v61  ;;  %v3106_v61 = vor.u32 %v3667_v43, %v3103_v45  ;;  %v3146_v33 = vor.u32 %v3677_v19, %v3143_v20  ;;  %v3199_v43 = vld [vmem:[%s4399_s6 + $0x598] sm:$0xf0]  ;;  %v3641_v45 = vld [vmem:[%s4399_s6 + $0x404] sm:$0xf]  ;;  %v3127_v53 = vld [vmem:[%s4399_s6 + $0x508] sm:$0xf0] }
 0x119   : > { %2206 = vmatpush.bf16.msra.mxu2 %v3186_v25  ;;  %2175 = vmatmul.bf16.vlgmr.msrb.gmra.mxu3 %v4563_v2  ;;  %v3234_v2 = vor.u32 %v3699_v48, %v3231_v49  ;;  %v3657_v49 = vld [vmem:[%s4399_s6 + $0x484] sm:$0xf]  ;;  %v3202_v52 = vor.u32 %v3691_v42, %v3199_v43  ;;  %v3002_v58 = vor.u32 %v3641_v45, %v2999_v46  ;;  %v3731_v19 = vld [vmem:[%s4399_s6 + $0x6d4] sm:$0xf]  ;;  %v3351_v42 = vld [vmem:[%s4399_s6 + $0x6c8] sm:$0xf0] }
 0x11a   : > { %2219 = vmatpush.bf16.msra.mxu3 %v3250_v30  ;;  %v3689_v1 = vld [vmem:[%s4399_s6 + $0x584] sm:$0xf]  ;;  %v3909_v20 = vld [vmem:[#allocation1] sm:$0xff] }
 0x11b   : > { %2181 = vmatpush.bf16.msra.mxu0 %v3050_v37  ;;  %v1955_v16 = vpop.f32.mrf.mxu2  ;;  %v1931_v31 = vpop.f32.mrf.mxu0  ;;  %v3733_v23 = vld [vmem:[%s4399_s6 + $0x6e4] sm:$0xf]  ;;  %v3743_v56 = vld [vmem:[%s4399_s6 + $0x734] sm:$0xf] }
 0x11c   : > { %2194 = vmatpush.bf16.msra.mxu1 %v3114_v39  ;;  %v1956_v24 = vadd.f32 %v1955_v16, %v1943_v10  ;;  %v1968_v25 = vpop.f32.mrf.mxu3  ;;  %v1944_v37 = vpop.f32.mrf.mxu1  ;;  %v3071_v39 = vld [vmem:[%s4399_s6 + $0x498] sm:$0xf0]  ;;  %v3367_v10 = vld [vmem:[%s4399_s6 + $0x6e8] sm:$0xf0]  ;;  %v3745_v43 = vld [vmem:[%s4399_s6 + $0x744] sm:$0xf] }
 0x11d   : > { %2207 = vmatpush.bf16.msra.mxu2 %v3178_v40  ;;  %v3675_v40 = vld [vmem:[%s4399_s6 + $0x514] sm:$0xf]  ;;  %v3074_v47 = vor.u32 %v3659_v36, %v3071_v39  ;;  %v3370_v15 = vor.u32 %v3733_v23, %v3367_v10  ;;  %v3911_v31 = vld [vmem:[#allocation1 + $0x9] sm:$0xff]  ;;  %v3426_v37 = vor.u32 %v3747_v26, %v3423_v28  ;;  %v3287_v39 = vld [vmem:[%s4399_s6 + $0x648] sm:$0xf0] }
 0x11e   : > { %2220 = vmatpush.bf16.msra.mxu3 %v3242_v44  ;;  %v4888_v30 = vadd.f32 %v1968_v25, %v1956_v24  ;;  %v3010_v44 = vor.u32 %v3643_v34, %v3007_v35  ;;  %v3138_v48 = vor.u32 %v3675_v40, %v3135_v41  ;;  %v3359_v25 = vld [vmem:[%s4399_s6 + $0x6d8] sm:$0xf0]  ;;  %v3912_v34 = vld [vmem:[#allocation1 + $0x1b] sm:$0xff]  ;;  %v3729_v40 = vld [vmem:[%s4399_s6 + $0x6c4] sm:$0xf] }
 0x11f   : > { %2182 = vmatpush.bf16.msra.mxu0 %v3042_v50  ;;  %v3063_v50 = vld [vmem:[%s4399_s6 + $0x488] sm:$0xf0]  ;;  %v3362_v36 = vor.u32 %v3731_v19, %v3359_v25  ;;  %v3761_v46 = vld [vmem:[%s4399_s6 + $0x7c4] sm:$0xf]  ;;  %v3327_v19 = vld [vmem:[%s4399_s6 + $0x698] sm:$0xf0] }
 0x120   : > { %2195 = vmatpush.bf16.msra.mxu1 %v3106_v61  ;;  %v3673_v61 = vld [vmem:[%s4399_s6 + $0x504] sm:$0xf]  ;;  %v3755_v25 = vld [vmem:[%s4399_s6 + $0x794] sm:$0xf]  ;;  %v3455_v26 = vld [vmem:[%s4399_s6 + $0x798] sm:$0xf0] }
 0x121   : > { %2208 = vmatpush.bf16.msra.mxu2 %v3170_v51  ;;  %v3130_v63 = vor.u32 %v3673_v61, %v3127_v53  ;;  %v3354_v61 = vor.u32 %v3729_v40, %v3351_v42  ;;  %v3279_v53 = vld [vmem:[%s4399_s6 + $0x638] sm:$0xf0]  ;;  %v3725_v0 = vld [vmem:[%s4399_s6 + $0x6a4] sm:$0xf] }
 0x122   : > { %2221 = vmatpush.bf16.msra.mxu3 %v3234_v2  ;;  %v3191_v2 = vld [vmem:[%s4399_s6 + $0x588] sm:$0xf0]  ;;  %v3757_v23 = vld [vmem:[%s4399_s6 + $0x7a4] sm:$0xf] }
 0x123   : > { %2183 = vmatpush.bf16.msra.mxu0 %v3034_v3  ;;  %v1957_v51 = vpop.f32.mrf.mxu2  ;;  %v3375_v3 = vld [vmem:[%s4399_s6 + $0x6f8] sm:$0xf0]  ;;  %v3194_v5 = vor.u32 %v3689_v1, %v3191_v2  ;;  %v3727_v1 = vld [vmem:[%s4399_s6 + $0x6b4] sm:$0xf]  ;;  %v3753_v40 = vld [vmem:[%s4399_s6 + $0x784] sm:$0xf] }
 0x124   : > { %2196 = vmatpush.bf16.msra.mxu1 %v3098_v60  ;;  %v1970_v54 = vpop.f32.mrf.mxu3  ;;  %v3439_v60 = vld [vmem:[%s4399_s6 + $0x778] sm:$0xf0] }
 0x125   : > { %2209 = vmatpush.bf16.msra.mxu2 %v3162_v62  ;;  %v3066_v62 = vor.u32 %v3657_v49, %v3063_v50  ;;  %v3442_v7 = vor.u32 %v3751_v59, %v3439_v60  ;;  %v3346_v59 = vor.u32 %v3727_v1, %v3343_v55 }
 0x126   : > { %2222 = vmatpush.bf16.msra.mxu3 %v3226_v6  ;;  %v3378_v6 = vor.u32 %v3735_v57, %v3375_v3  ;;  %v3759_v57 = vld [vmem:[%s4399_s6 + $0x7b4] sm:$0xf] }
 0x127   : > { %2184 = vmatpush.bf16.msra.mxu0 %v3026_v27  ;;  %v3749_v27 = vld [vmem:[%s4399_s6 + $0x764] sm:$0xf] }
 0x128   : > { %2197 = vmatpush.bf16.msra.mxu1 %v3090_v11  ;;  %v3431_v11 = vld [vmem:[%s4399_s6 + $0x768] sm:$0xf0] }
 0x129   : > { %2210 = vmatpush.bf16.msra.mxu2 %v3154_v12  ;;  %v3765_v12 = vld [vmem:[%s4399_s6 + $0x7e4] sm:$0xf]  ;;  %v3434_v16 = vor.u32 %v3749_v27, %v3431_v11 }
 0x12a   : > { %2223 = vmatpush.bf16.msra.mxu3 %v3218_v17  ;;  %v3715_v17 = vld [vmem:[%s4399_s6 + $0x654] sm:$0xf]  ;;  %v3498_v24 = vor.u32 %v3765_v12, %v3495_v13 }
 0x12b   : > { %2185 = vmatpush.bf16.msra.mxu0 %v3018_v29  ;;  %v3910_v29 = vld [vmem:[#allocation1 + $0x12] sm:$0xff]  ;;  %v3298_v35 = vor.u32 %v3715_v17, %v3295_v18  ;;  %v3723_v17 = vld [vmem:[%s4399_s6 + $0x694] sm:$0xf] }
 0x12c   : > { %2198 = vmatpush.bf16.msra.mxu1 %v3082_v32  ;;  %v3763_v32 = vld [vmem:[%s4399_s6 + $0x7d4] sm:$0xf] }
 0x12d   : > { %2211 = vmatpush.bf16.msra.mxu2 %v3146_v33  ;;  %v3487_v33 = vld [vmem:[%s4399_s6 + $0x7d8] sm:$0xf0] }
 0x12e   : > { %2224 = vmatpush.bf16.msra.mxu3 %v3210_v38  ;;  %v3713_v38 = vld [vmem:[%s4399_s6 + $0x644] sm:$0xf]  ;;  %v3490_v41 = vor.u32 %v3763_v32, %v3487_v33  ;;  %v3255_v33 = vld [vmem:[%s4399_s6 + $0x608] sm:$0xf0] }
 0x12f   : > { %2186 = vmatpush.bf16.msra.mxu0 %v3010_v44  ;;  %v3415_v44 = vld [vmem:[%s4399_s6 + $0x748] sm:$0xf0]  ;;  %v3290_v49 = vor.u32 %v3713_v38, %v3287_v39  ;;  %v3705_v32 = vld [vmem:[%s4399_s6 + $0x604] sm:$0xf] }
 0x130   : > { %2199 = vmatpush.bf16.msra.mxu1 %v3074_v47  ;;  %v3479_v47 = vld [vmem:[%s4399_s6 + $0x7c8] sm:$0xf0]  ;;  %v3418_v51 = vor.u32 %v3745_v43, %v3415_v44  ;;  %v3258_v43 = vor.u32 %v3705_v32, %v3255_v33 }
 0x131   : > { %2212 = vmatpush.bf16.msra.mxu2 %v3138_v48  ;;  %v3482_v2 = vor.u32 %v3761_v46, %v3479_v47  ;;  %v3383_v38 = vld [vmem:[%s4399_s6 + $0x708] sm:$0xf0]  ;;  %v3913_v47 = vld [vmem:[#allocation1 + $0x24] sm:$0xff] }
 0x132   : > { %2225 = vmatpush.bf16.msra.mxu3 %v3202_v52  ;;  %v3711_v52 = vld [vmem:[%s4399_s6 + $0x634] sm:$0xf] }
 0x133   : > { %2187 = vmatpush.bf16.msra.mxu0 %v3002_v58  ;;  %v1981_v45 = vpop.f32.mrf.mxu0  ;;  %v3471_v58 = vld [vmem:[%s4399_s6 + $0x7b8] sm:$0xf0]  ;;  %v3282_v3 = vor.u32 %v3711_v52, %v3279_v53 }
 0x134   : > { %2200 = vmatpush.bf16.msra.mxu1 %v3066_v62  ;;  %v1982_v48 = vadd.f32 %v1981_v45, %v4888_v30  ;;  %v1994_v50 = vpop.f32.mrf.mxu1  ;;  %v3407_v30 = vld [vmem:[%s4399_s6 + $0x738] sm:$0xf0]  ;;  %v3709_v62 = vld [vmem:[%s4399_s6 + $0x624] sm:$0xf]  ;;  %v3474_v4 = vor.u32 %v3759_v57, %v3471_v58 }
 0x135   : > { %2213 = vmatpush.bf16.msra.mxu2 %v3130_v63  ;;  %v3410_v60 = vor.u32 %v3743_v56, %v3407_v30  ;;  %v3271_v63 = vld [vmem:[%s4399_s6 + $0x628] sm:$0xf0] }
 0x136   : > { %2226 = vmatpush.bf16.msra.mxu3 %v3194_v5  ;;  %2188 = vmatmul.bf16.vlgmr.msra.gmra.mxu0 %v3909_v20  ;;  %v1995_v54 = vadd.f32 %v1994_v50, %v1982_v48  ;;  %v3274_v27 = vor.u32 %v3709_v62, %v3271_v63  ;;  %v3739_v20 = vld [vmem:[%s4399_s6 + $0x714] sm:$0xf]  ;;  %v3914_v48 = vld [vmem:[#allocation1 + $0x2d] sm:$0xff] }
 0x137   : > { %2232 = vmatpush.bf16.msrb.mxu0 %v3314_v21  ;;  %2201 = vmatmul.bf16.vlgmr.msra.gmra.mxu1 %v3911_v31  ;;  %v3335_v21 = vld [vmem:[%s4399_s6 + $0x6a8] sm:$0xf0]  ;;  %v3916_v50 = vld [vmem:[#allocation1 + $0x3f] sm:$0xff] }
 0x138   : > { %2245 = vmatpush.bf16.msrb.mxu1 %v3378_v6  ;;  %2214 = vmatmul.bf16.vlgmr.msra.gmra.mxu2 %v3910_v29  ;;  %v3741_v6 = vld [vmem:[%s4399_s6 + $0x724] sm:$0xf]  ;;  %v3338_v13 = vor.u32 %v3725_v0, %v3335_v21  ;;  %v3330_v29 = vor.u32 %v3723_v17, %v3327_v19 }
 0x139   : > { %2258 = vmatpush.bf16.msrb.mxu2 %v3442_v7  ;;  %2227 = vmatmul.bf16.vlgmr.msra.gmra.mxu3 %v3912_v34  ;;  %v3399_v7 = vld [vmem:[%s4399_s6 + $0x728] sm:$0xf0]  ;;  %v3721_v34 = vld [vmem:[%s4399_s6 + $0x684] sm:$0xf] }
 0x13a   : > { %2271 = vmatpush.bf16.msrb.mxu3 %v3506_v9  ;;  %v3463_v9 = vld [vmem:[%s4399_s6 + $0x7a8] sm:$0xf0] }
 0x13b   : > { %2233 = vmatpush.bf16.msrb.mxu0 %v3306_v14  ;;  %v2007_v5 = vpop.f32.mrf.mxu2  ;;  %v1983_v10 = vpop.f32.mrf.mxu0  ;;  %v3402_v14 = vor.u32 %v3741_v6, %v3399_v7  ;;  %v3466_v18 = vor.u32 %v3757_v23, %v3463_v9 }
 0x13c   : > { %2246 = vmatpush.bf16.msrb.mxu1 %v3370_v15  ;;  %v2008_v22 = vadd.f32 %v2007_v5, %v1995_v54  ;;  %v2020_v8 = vpop.f32.mrf.mxu3  ;;  %v1996_v11 = vpop.f32.mrf.mxu1  ;;  %v3707_v15 = vld [vmem:[%s4399_s6 + $0x614] sm:$0xf] }
 0x13d   : > { %2259 = vmatpush.bf16.msrb.mxu2 %v3434_v16  ;;  %v3263_v16 = vld [vmem:[%s4399_s6 + $0x618] sm:$0xf0] }
 0x13e   : > { %2272 = vmatpush.bf16.msrb.mxu3 %v3498_v24  ;;  %v2021_v12 = vadd.f32 %v2020_v8, %v2008_v22  ;;  %v3391_v24 = vld [vmem:[%s4399_s6 + $0x718] sm:$0xf0]  ;;  %v3266_v28 = vor.u32 %v3707_v15, %v3263_v16 }
 0x13f   : > { %2234 = vmatpush.bf16.msrb.mxu0 %v3298_v35  ;;  %v3394_v31 = vor.u32 %v3739_v20, %v3391_v24  ;;  %v3458_v35 = vor.u32 %v3755_v25, %v3455_v26 }
 0x140   : > { %2247 = vmatpush.bf16.msrb.mxu1 %v3362_v36  ;;  %v3319_v36 = vld [vmem:[%s4399_s6 + $0x688] sm:$0xf0] }
 0x141   : > { %2260 = vmatpush.bf16.msrb.mxu2 %v3426_v37  ;;  %v3737_v37 = vld [vmem:[%s4399_s6 + $0x704] sm:$0xf]  ;;  %v3322_v44 = vor.u32 %v3721_v34, %v3319_v36 }
 0x142   : > { %2273 = vmatpush.bf16.msrb.mxu3 %v3490_v41  ;;  %v3447_v41 = vld [vmem:[%s4399_s6 + $0x788] sm:$0xf0]  ;;  %v3386_v45 = vor.u32 %v3737_v37, %v3383_v38 }
 0x143   : > { %2235 = vmatpush.bf16.msrb.mxu0 %v3290_v49  ;;  %v2009_v39 = vpop.f32.mrf.mxu2  ;;  %v3450_v46 = vor.u32 %v3753_v40, %v3447_v41  ;;  %v3915_v49 = vld [vmem:[#allocation1 + $0x36] sm:$0xff] }
 0x144   : > { %2248 = vmatpush.bf16.msrb.mxu1 %v3354_v61  ;;  %v2022_v42 = vpop.f32.mrf.mxu3 }
 0x145   : > { %2261 = vmatpush.bf16.msrb.mxu2 %v3418_v51 }
 0x146   : > { %2274 = vmatpush.bf16.msrb.mxu3 %v3482_v2 }
 0x147   : > { %2236 = vmatpush.bf16.msrb.mxu0 %v3282_v3 }
 0x148   : > { %2249 = vmatpush.bf16.msrb.mxu1 %v3346_v59 }
 0x149   : > { %2262 = vmatpush.bf16.msrb.mxu2 %v3410_v60 }
 0x14a   : > { %2275 = vmatpush.bf16.msrb.mxu3 %v3474_v4 }
 0x14b   : > { %2237 = vmatpush.bf16.msrb.mxu0 %v3274_v27 }
 0x14c   : > { %2250 = vmatpush.bf16.msrb.mxu1 %v3338_v13 }
 0x14d   : > { %2263 = vmatpush.bf16.msrb.mxu2 %v3402_v14 }
 0x14e   : > { %2276 = vmatpush.bf16.msrb.mxu3 %v3466_v18 }
 0x14f   : > { %2238 = vmatpush.bf16.msrb.mxu0 %v3266_v28 }
 0x150   : > { %2251 = vmatpush.bf16.msrb.mxu1 %v3330_v29 }
 0x151   : > { %2264 = vmatpush.bf16.msrb.mxu2 %v3394_v31 }
 0x152   : > { %2277 = vmatpush.bf16.msrb.mxu3 %v3458_v35 }
 0x153   : > { %2239 = vmatpush.bf16.msrb.mxu0 %v3258_v43  ;;  %v2033_v61 = vpop.f32.mrf.mxu0 }
 0x154   : > { %2252 = vmatpush.bf16.msrb.mxu1 %v3322_v44  ;;  %v2034_v51 = vadd.f32 %v2033_v61, %v2021_v12  ;;  %v2046_v52 = vpop.f32.mrf.mxu1  ;;  %v293_v44 = vld [vmem:[#allocation2] sm:$0xf] }
 0x155   : > { %2265 = vmatpush.bf16.msrb.mxu2 %v3386_v45 }
 0x156   : > { %2278 = vmatpush.bf16.msrb.mxu3 %v3450_v46  ;;  %2240 = vmatmul.bf16.vlgmr.msrb.gmra.mxu0 %v3913_v47  ;;  %v2047_v53 = vadd.f32 %v2046_v52, %v2034_v51 }
 0x157   : > { %2253 = vmatmul.bf16.vlgmr.msrb.gmra.mxu1 %v3914_v48 }
 0x158   : > { %2266 = vmatmul.bf16.vlgmr.msrb.gmra.mxu2 %v3915_v49 }
 0x159   : > { %2279 = vmatmul.bf16.vlgmr.msrb.gmra.mxu3 %v3916_v50 }
 0x15b   : > { %v2059_v1 = vpop.f32.mrf.mxu2  ;;  %v2035_v55 = vpop.f32.mrf.mxu0 }
 0x15c   : > { %v2060_v2 = vadd.f32 %v2059_v1, %v2047_v53  ;;  %v2072_v54 = vpop.f32.mrf.mxu3  ;;  %v2048_v56 = vpop.f32.mrf.mxu1 }
 0x15e   : > { %v2073_v30 = vadd.f32 %v2072_v54, %v2060_v2 }
 0x163   : > { %v2061_v57 = vpop.f32.mrf.mxu2 }
 0x164   : > { %v2074_v58 = vpop.f32.mrf.mxu3 }
 0x173   : > { %v2085_v3 = vpop.f32.mrf.mxu0 }
 0x174   : > { %v2098_v59 = vpop.f32.mrf.mxu1 }
 0x175   : > { %v2099_v60 = vadd.f32 %v2098_v59, %v2085_v3 }
 0x17b   : > { %v2111_v62 = vpop.f32.mrf.mxu2  ;;  %v2087_v5 = vpop.f32.mrf.mxu0 }
 0x17c   : > { %v2112_v63 = vadd.f32 %v2111_v62, %v2099_v60  ;;  %v2124_v0 = vpop.f32.mrf.mxu3  ;;  %v2100_v21 = vpop.f32.mrf.mxu1 }
 0x17e   : > { %v2125_v4 = vadd.f32 %v2124_v0, %v2112_v63 }
 0x183   : > { %v2113_v6 = vpop.f32.mrf.mxu2 }
 0x184   : > { %v2126_v7 = vpop.f32.mrf.mxu3 }
 0x193   : > { %v2137_v22 = vpop.f32.mrf.mxu0 }
 0x194   : > { %v2150_v8 = vpop.f32.mrf.mxu1  ;;  %v2138_v15 = vadd.f32 %v2137_v22, %v2125_v4 }
 0x196   : > { %v2151_v19 = vadd.f32 %v2150_v8, %v2138_v15 }
 0x19b   : > { %v2163_v23 = vpop.f32.mrf.mxu2  ;;  %v2139_v10 = vpop.f32.mrf.mxu0 }
 0x19c   : > { %v2176_v9 = vpop.f32.mrf.mxu3  ;;  %v2152_v27 = vpop.f32.mrf.mxu1  ;;  %v2164_v24 = vadd.f32 %v2163_v23, %v2151_v19 }
 0x19e   : > { %v2177_v28 = vadd.f32 %v2176_v9, %v2164_v24 }
 0x1a3   : > { %v2165_v11 = vpop.f32.mrf.mxu2 }
 0x1a4   : > { %v2178_v12 = vpop.f32.mrf.mxu3 }
 0x1b3   : > { %v2189_v13 = vpop.f32.mrf.mxu0 }
 0x1b4   : > { %v2202_v14 = vpop.f32.mrf.mxu1  ;;  %v2190_v29 = vadd.f32 %v2189_v13, %v2177_v28 }
 0x1b6   : > { %v2203_v31 = vadd.f32 %v2202_v14, %v2190_v29 }
 0x1bb   : > { %v2215_v16 = vpop.f32.mrf.mxu2  ;;  %v2191_v18 = vpop.f32.mrf.mxu0 }
 0x1bc   : > { %v2228_v17 = vpop.f32.mrf.mxu3  ;;  %v2204_v20 = vpop.f32.mrf.mxu1  ;;  %v2216_v32 = vadd.f32 %v2215_v16, %v2203_v31 }
 0x1be   : > { %v2229_v33 = vadd.f32 %v2228_v17, %v2216_v32 }
 0x1c3   : > { %v2217_v25 = vpop.f32.mrf.mxu2 }
 0x1c4   : > { %v2230_v26 = vpop.f32.mrf.mxu3 }
 0x1d3   : > { %v2241_v34 = vpop.f32.mrf.mxu0 }
 0x1d4   : > { %v2254_v35 = vpop.f32.mrf.mxu1  ;;  %v2242_v36 = vadd.f32 %v2241_v34, %v2229_v33 }
 0x1d6   : > { %v2255_v37 = vadd.f32 %v2254_v35, %v2242_v36 }
 0x1db   : > { %v2267_v38 = vpop.f32.mrf.mxu2  ;;  %v2243_v41 = vpop.f32.mrf.mxu0 }
 0x1dc   : > { %v2268_v39 = vadd.f32 %v2267_v38, %v2255_v37  ;;  %v2280_v40 = vpop.f32.mrf.mxu3  ;;  %v2256_v42 = vpop.f32.mrf.mxu1 }
 0x1de   : > { %v2281_v43 = vadd.f32 %v2280_v40, %v2268_v39 }
 0x1e0   : > { %v2286_v45 = vrot.slane %v2281_v43, 6 }
 0x1e1   : > { %2295 = sbr.rel (%p3507_p8) target bundleno = 511 (0x1ff), region = 52 }
 0x1e2   : > { %v2288_v46 = vsel %vm2287_vm0, %v2073_v30, %v2286_v45 }
 0x1e3   : > { %v2290_v47 = vadd.f32 %v2288_v46, %v293_v44  ;;  %v2269_v48 = vpop.f32.mrf.mxu2 }
 0x1e4   : > { %v2282_v49 = vpop.f32.mrf.mxu3 }
 0x1e5   : > { %2291 = vst [vmem:[#allocation2] sm:$0xf] %v2290_v47 }
 0x1e6   : > { %v2297_v50 = vld [vmem:[%s249_s8] sm:$0x3]  ;;  %vm2315_vm1 = vcmask 1040384  }
 0x1e7   : > { %v2299_v61 = vperm.slane %v2297_v50, 0  ;;  %v2300_v51 = vperm.slane %v2297_v50, 1 }
 0x1e9   : > { %v2301_v53 = vrot.slane %v2300_v51, 6 }
 0x1eb   : > { %v2302_v1 = vsel %vm2287_vm0, %v2299_v61, %v2301_v53 }
 0x1ec   : > { %v2296_v52 = vld [vmem:[#allocation2] sm:$0xf] }
 0x1ed   : > { %v2304_v2 = vadd.f32 %v2302_v1, %v2296_v52 }
 0x1ef   : > { %v2305_v54 = vmax.f32 %v2304_v2, 0.0 }
 0x1f1   : > { %2307 = vst [vmem:[#allocation1] ss:$4 sm:$0xff] %v2305_v54 }
 0x1f8   : > { %v2308_v55 = vld.sshfl [vmem:[#allocation1] sm:$0xff pattern:$0x73625140]  ;;  %v2309_v56 = vld.sshfl [vmem:[#allocation1 + $0x8] sm:$0xff pattern:$0x73625140] }
 0x1f9   : > { %v2312_v30 = vpack.c.bf16 %v2309_v56, %v2308_v55 }
 0x1fb   : > { %v2314_v57 = vrot.slane %v2312_v30, 3 }
 0x1fd   : > { %v2318_v58 = vsel %vm2315_vm1, %v2312_v30, %v2314_v57 }
 0x1fe   : > { %2320 = vst [vmem:[%s282_s10] sm:$0x3] %v2318_v58 }
 0x1ff PF: > { %s3509_s21 = sshll.u32 %s4149_s22, 1  ;;  %s5078_s3 = sld [smem:[#allocation22_spill]] }
 0x200   : > { %s2334_s20 = sshll.u32 %s282_s10, 4  ;;  %s2322_s15 = scalar_lea.sflag [#allocation5], %s247_s27  ;;  %s2335_s20 = int_to_ptr.vmem [resolvable:$true] %s2334_s20 }
 0x205   : > { %s2332_s11 = scalar_lea.hbm %s5078_s3, %s3509_s21  ;;  %s4027_s9 = scalar_lea.hbm %s5078_s3, 4 }
 0x206   : > { %s2336_s23 = sshll.u32 %s2332_s11, 4  ;;  %s2337_s23 = int_to_ptr.hbm [resolvable:$true] %s2336_s23 }
 0x207   : > { %s4021_s28 = sshra.s32 %s2337_s23, 4  ;;  %s4022_s28 = int_to_ptr.hbm [resolvable:$true] %s4021_s28 }
 0x208   : > { %s4023_s0 = scalar_lea.hbm %s4022_s28, 2  ;;  %p4028_p10 = scmp.lt.s32.totalorder %s4022_s28, %s5078_s3 }
 0x209   : > { %p4024_p3 = scmp.ne.s32.totalorder %s4022_s28, %s4023_s0  ;;  %p4029_p11 = scmp.lt.s32.totalorder %s4027_s9, %s4023_s0 }
 0x20b   : > { %p4025_p5 = pnand %p4024_p3, %p4369_p2  ;;  %p4030_p13 = por %p4029_p11, %p4028_p10 }
 0x20d   : > { %p4026_p6 = pneg %p4025_p5 }
 0x20f   : > { %p4031_p1 = pnand %p4030_p13, %p4026_p6 }
 0x211   : > { %4034 = shalt.err (!%p4031_p1)
}
 0x212   : > { %3775 = dma.vmem_to_hbm [thread:$0]  (%p4369_p2), %s2335_s20, 32, %s2337_s23, %s2322_s15  }
 0x213 PF: > { %p3792_p12 = scmp.ge.s32.totalorder %s4161_s25, 2  ;;  %s2348_s27 = sand.u32 1, %s4109_s12  }
 0x214   : > { %s2349_s5 = scalar_lea.sflag [#allocation5], %s2348_s27 }
 0x215   : > { %p3788_p7 = pnand %p3792_p12, %p4373_p9 }
 0x217   : > { %p3789_p0 = pneg %p3788_p7 }
 0x219   : > { %4104 = dma.done.wait (%p3789_p0), %s2349_s5, 32  }
 0x21a   : > { %4106 = vsyncadd (%p3789_p0), %s2349_s5, 4294967264  ;;  %s22_s25 = sadd.s32 1, %s4161_s25   ;;  %s5080_s7 = sld [smem:[#allocation14_spill]] }
 0x21b   : > { %p4999_p4 = scmp.ge.s32.totalorder %s22_s25, 6   ;;  %s5081_s20 = sld [smem:[#allocation19_spill]] }
 0x21c   : > { %s5082_s21 = sld [smem:[#allocation15_spill]]  ;;  %s5086_s12 = smov %s4113_s13 }
 0x21d   : > { %s5083_s22 = sld [smem:[#allocation16_spill]]  ;;  %s5087_s13 = smov %s4117_s14 }
 0x21e   : > { %s5084_s23 = sld [smem:[#allocation17_spill]]  ;;  %s5088_s14 = smov %s4351_s26 }
 0x21f   : > { %s5085_s24 = sld [smem:[#allocation18_spill]]  ;;  %s5089_s15 = smov %s4125_s16 }
 0x220   : > { %s5090_s16 = smov %s4129_s17  ;;  %s5091_s17 = smov %s4337_s18 }
 0x221   : > { %s5092_s18 = smov %s4137_s19  ;;  %s5093_s19 = smov %s5080_s7 }
 0x222   :  { %21 = sbr.rel (!%p4999_p4) target bundleno = 16 (0x10), region = 109 }
 0x227   :  { %2355 = vsyncpa [#allocation4], 1 }
 0x228   :  { %2357 = vsyncpa [#allocation4 + $0x1], 1 }
 0x229   :  { %2358 = vsyncpa [#allocation7], 1 }
 0x22a   :  { %2360 = vsyncpa [#allocation7 + $0x1], 1 }
 0x22b   :  { %2361 = vsyncpa [#allocation5], 1 }
 0x22c   :  { %2363 = vsyncpa [#allocation5 + $0x1], 1 }

</bundles_post_ra>
